<compile_context>
chip_gen: v7x
topology: tpu7x:2x2x1
jax: 0.10.0
libtpu: 0.0.40
codegen_flags: <defaults>
</compile_context>

<pallas_src>
import math
from functools import partial

import numpy as np
import jax
import jax.numpy as jnp
from jax.experimental import pallas as pl
from jax.experimental.pallas import tpu as pltpu


# Default matmul tiles (bf16 operands + f32 acc stay well under the 32 MiB
# default scoped VMEM on v5e/v6e/v7x; re-derive / shrink for v7x if raised).
DEF_TM, DEF_TN, DEF_TK = 256, 256, 512


# ----------------------------------------------------------------------------
# small helpers
# ----------------------------------------------------------------------------
def _round_up(x, m):
    return ((x + m - 1) // m) * m


def _pad_axis(a, axis, target):
    if a.shape[axis] == target:
        return a
    pads = [(0, 0)] * a.ndim
    pads[axis] = (0, target - a.shape[axis])
    return jnp.pad(a, pads)


def _pick(dim, tile):
    """Return (padded_dim, tile): full-extent block if dim <= tile, else pad."""
    if dim <= tile:
        return dim, dim
    return _round_up(dim, tile), tile


def _activation(act, y):
    if act == "gelu":      # exact (erf) GELU == nn.GELU default
        return 0.5 * y * (1.0 + jax.lax.erf(y * (1.0 / math.sqrt(2.0))))
    if act == "silu":
        return y * jax.nn.sigmoid(y)
    return y


def _rope_rows(x, cos_t, sin_a, sin_b, half):
    """RoPE applied independently to each `2*half`-wide segment of the lane dim.

    x: (L, W) f32.  cos_t/sin_a/sin_b: (L, W) precomputed tables where sin_a is
    -sin masked to first-half lanes (multiplies x[j+half]) and sin_b is sin
    masked to second-half lanes (multiplies x[j-half]).  Wrap-around lanes of
    the shifts land on zero-masked table entries, so plain lane shifts suffice.
    """
    W = x.shape[-1]
    left = jnp.concatenate([x[:, half:], x[:, :half]], axis=-1)        # x[j+half]
    right = jnp.concatenate([x[:, W - half:], x[:, :W - half]], axis=-1)  # x[j-half]
    return x * cos_t + left * sin_a + right * sin_b


# ----------------------------------------------------------------------------
# tiled linear (optional bias / activation), bf16 operands, f32 accumulation
# ----------------------------------------------------------------------------
def _matmul_kernel(act, has_bias, x_ref, w_ref, *rest):
    if has_bias:
        b_ref, o_ref, acc_ref = rest
    else:
        o_ref, acc_ref = rest
        b_ref = None

    @pl.when(pl.program_id(2) == 0)
    def _():
        acc_ref[...] = jnp.zeros_like(acc_ref)

    acc_ref[...] += jnp.dot(x_ref[...].astype(jnp.bfloat16), w_ref[...],
                            preferred_element_type=jnp.float32)

    @pl.when(pl.program_id(2) == pl.num_programs(2) - 1)
    def _():
        y = acc_ref[...]
        if has_bias:
            y = y + b_ref[...]
        o_ref[...] = _activation(act, y).astype(o_ref.dtype)


def linear(x, w, b=None, act="none", out_dtype=jnp.float32,
           tm=DEF_TM, tn=DEF_TN, tk=DEF_TK):
    M, K = x.shape
    Kw, N = w.shape
    assert K == Kw
    Mp, tm = _pick(M, tm)
    Np, tn = _pick(N, tn)
    Kp, tk = _pick(K, tk)
    x = _pad_axis(_pad_axis(x, 0, Mp), 1, Kp)
    w = _pad_axis(_pad_axis(w.astype(jnp.bfloat16), 0, Kp), 1, Np)
    has_bias = b is not None
    inputs = [x, w]
    in_specs = [
        pl.BlockSpec((tm, tk), lambda i, j, k: (i, k)),
        pl.BlockSpec((tk, tn), lambda i, j, k: (k, j)),
    ]
    if has_bias:
        inputs.append(_pad_axis(b.reshape(1, N).astype(jnp.float32), 1, Np))
        in_specs.append(pl.BlockSpec((1, tn), lambda i, j, k: (0, j)))
    out = pl.pallas_call(
        partial(_matmul_kernel, act, has_bias),
        grid=(Mp // tm, Np // tn, Kp // tk),
        in_specs=in_specs,
        out_specs=pl.BlockSpec((tm, tn), lambda i, j, k: (i, j)),
        out_shape=jax.ShapeDtypeStruct((Mp, Np), out_dtype),
        scratch_shapes=[pltpu.VMEM((tm, tn), jnp.float32)],
        compiler_params=pltpu.CompilerParams(
            dimension_semantics=("parallel", "parallel", "arbitrary")),
    )(*inputs)
    return out[:M, :N]


# ----------------------------------------------------------------------------
# LayerNorm prologue fused into a linear (K kept full: LN needs whole rows)
# ----------------------------------------------------------------------------
def _ln_linear_kernel(act, has_bias, eps, x_ref, g_ref, beta_ref, w_ref, *rest):
    if has_bias:
        b_ref, o_ref = rest
    else:
        (o_ref,) = rest
        b_ref = None
    x = x_ref[...].astype(jnp.float32)
    mu = jnp.mean(x, axis=-1, keepdims=True)
    var = jnp.mean(jnp.square(x - mu), axis=-1, keepdims=True)
    xn = (x - mu) * jax.lax.rsqrt(var + eps) * g_ref[...] + beta_ref[...]
    y = jnp.dot(xn.astype(jnp.bfloat16), w_ref[...],
                preferred_element_type=jnp.float32)
    if has_bias:
        y = y + b_ref[...]
    o_ref[...] = _activation(act, y).astype(o_ref.dtype)


def fused_ln_linear(x, g, beta, w, b=None, act="none", eps=1e-5,
                    out_dtype=jnp.float32, tm=DEF_TM, tn=DEF_TN):
    M, K = x.shape
    Kw, N = w.shape
    assert K == Kw
    Mp, tm = _pick(M, tm)
    Np, tn = _pick(N, tn)
    x = _pad_axis(x, 0, Mp)
    w = _pad_axis(w.astype(jnp.bfloat16), 1, Np)
    has_bias = b is not None
    inputs = [x,
              g.reshape(1, K).astype(jnp.float32),
              beta.reshape(1, K).astype(jnp.float32),
              w]
    in_specs = [
        pl.BlockSpec((tm, K), lambda i, j: (i, 0)),
        pl.BlockSpec((1, K), lambda i, j: (0, 0)),
        pl.BlockSpec((1, K), lambda i, j: (0, 0)),
        pl.BlockSpec((K, tn), lambda i, j: (0, j)),
    ]
    if has_bias:
        inputs.append(_pad_axis(b.reshape(1, N).astype(jnp.float32), 1, Np))
        in_specs.append(pl.BlockSpec((1, tn), lambda i, j: (0, j)))
    out = pl.pallas_call(
        partial(_ln_linear_kernel, act, has_bias, eps),
        grid=(Mp // tm, Np // tn),
        in_specs=in_specs,
        out_specs=pl.BlockSpec((tm, tn), lambda i, j: (i, j)),
        out_shape=jax.ShapeDtypeStruct((Mp, Np), out_dtype),
        compiler_params=pltpu.CompilerParams(
            dimension_semantics=("parallel", "parallel")),
    )(*inputs)
    return out[:M, :N]


# ----------------------------------------------------------------------------
# linear + bias + residual + LayerNorm epilogue (K tiled, output-N kept full)
# ----------------------------------------------------------------------------
def _linear_res_ln_kernel(eps, x_ref, w_ref, b_ref, r_ref, g_ref, beta_ref,
                          o_ref, acc_ref):
    k = pl.program_id(1)

    @pl.when(k == 0)
    def _():
        acc_ref[...] = jnp.zeros_like(acc_ref)

    acc_ref[...] += jnp.dot(x_ref[...].astype(jnp.bfloat16), w_ref[...],
                            preferred_element_type=jnp.float32)

    @pl.when(k == pl.num_programs(1) - 1)
    def _():
        y = acc_ref[...] + b_ref[...] + r_ref[...].astype(jnp.float32)
        mu = jnp.mean(y, axis=-1, keepdims=True)
        var = jnp.mean(jnp.square(y - mu), axis=-1, keepdims=True)
        o_ref[...] = ((y - mu) * jax.lax.rsqrt(var + eps) * g_ref[...]
                      + beta_ref[...]).astype(o_ref.dtype)


def linear_residual_ln(x, w, b, residual, g, beta, eps=1e-5,
                       out_dtype=jnp.float32, tm=DEF_TM, tk=DEF_TK):
    M, K = x.shape
    Kw, N = w.shape
    assert K == Kw and residual.shape == (M, N)
    Mp, tm = _pick(M, tm)
    Kp, tk = _pick(K, tk)
    x = _pad_axis(_pad_axis(x, 0, Mp), 1, Kp)
    w = _pad_axis(w.astype(jnp.bfloat16), 0, Kp)
    residual = _pad_axis(residual.astype(jnp.float32), 0, Mp)
    out = pl.pallas_call(
        partial(_linear_res_ln_kernel, eps),
        grid=(Mp // tm, Kp // tk),
        in_specs=[
            pl.BlockSpec((tm, tk), lambda i, k: (i, k)),
            pl.BlockSpec((tk, N), lambda i, k: (k, 0)),
            pl.BlockSpec((1, N), lambda i, k: (0, 0)),
            pl.BlockSpec((tm, N), lambda i, k: (i, 0)),
            pl.BlockSpec((1, N), lambda i, k: (0, 0)),
            pl.BlockSpec((1, N), lambda i, k: (0, 0)),
        ],
        out_specs=pl.BlockSpec((tm, N), lambda i, k: (i, 0)),
        out_shape=jax.ShapeDtypeStruct((Mp, N), out_dtype),
        scratch_shapes=[pltpu.VMEM((tm, N), jnp.float32)],
        compiler_params=pltpu.CompilerParams(
            dimension_semantics=("parallel", "arbitrary")),
    )(x, w, b.reshape(1, N).astype(jnp.float32), residual,
      g.reshape(1, N).astype(jnp.float32), beta.reshape(1, N).astype(jnp.float32))
    return out[:M]


# ----------------------------------------------------------------------------
# fused RoPE + causal attention, all heads per grid step, lane-dense I/O
# ----------------------------------------------------------------------------
def _attn_kernel(H, Dh, scale, qkv_ref, cos_ref, sa_ref, sb_ref, o_ref):
    R = H * Dh
    half = Dh // 2
    t = qkv_ref[0].astype(jnp.float32)                 # (L, 3R)
    L = t.shape[0]
    cos = cos_ref[...]
    sa = sa_ref[...]
    sb = sb_ref[...]
    q = _rope_rows(t[:, :R], cos, sa, sb, half)        # (L, R)
    k = _rope_rows(t[:, R:2 * R], cos, sa, sb, half)
    v = t[:, 2 * R:]

    def heads(x):   # (L, R) -> (H, L, Dh) via static lane slices + leading concat
        return jnp.concatenate(
            [x[None, :, h * Dh:(h + 1) * Dh] for h in range(H)], axis=0)

    qs, ks, vs = heads(q), heads(k), heads(v)
    s = jnp.einsum('hqd,hkd->hqk',
                   qs.astype(jnp.bfloat16), ks.astype(jnp.bfloat16),
                   preferred_element_type=jnp.float32) * scale
    row = jax.lax.broadcasted_iota(jnp.int32, (H, L, L), 1)
    col = jax.lax.broadcasted_iota(jnp.int32, (H, L, L), 2)
    s = jnp.where(col <= row, s, -1e30)                # causal mask (f32 scores)
    s = s - jnp.max(s, axis=-1, keepdims=True)
    p = jnp.exp(s)
    p = p * pl.reciprocal(jnp.sum(p, axis=-1, keepdims=True), approx=True)
    o = jnp.einsum('hqk,hkd->hqd',
                   p.astype(jnp.bfloat16), vs.astype(jnp.bfloat16),
                   preferred_element_type=jnp.float32)  # (H, L, Dh)
    o_ref[0] = jnp.concatenate([o[h] for h in range(H)], axis=-1).astype(o_ref.dtype)


def rope_causal_attention(qkv, cos_t, sin_a, sin_b, H, Dh):
    """qkv: (B, L, 3*H*Dh); tables: (L, H*Dh).  Returns (B, L, H*Dh)."""
    B, L, threeR = qkv.shape
    R = H * Dh
    scale = 1.0 / math.sqrt(Dh)
    return pl.pallas_call(
        partial(_attn_kernel, H, Dh, scale),
        grid=(B,),
        in_specs=[
            pl.BlockSpec((1, L, threeR), lambda b: (b, 0, 0)),
            pl.BlockSpec((L, R), lambda b: (0, 0)),
            pl.BlockSpec((L, R), lambda b: (0, 0)),
            pl.BlockSpec((L, R), lambda b: (0, 0)),
        ],
        out_specs=pl.BlockSpec((1, L, R), lambda b: (b, 0, 0)),
        out_shape=jax.ShapeDtypeStruct((B, L, R), jnp.float32),
        compiler_params=pltpu.CompilerParams(dimension_semantics=("parallel",)),
    )(qkv, cos_t, sin_a, sin_b)


# ----------------------------------------------------------------------------
# importance RoPE (q & k together) on lane-dense [B, L, N*H*dDash]
# ----------------------------------------------------------------------------
def _rope_pair_kernel(half, q_ref, k_ref, cos_ref, sa_ref, sb_ref, oq_ref, ok_ref):
    cos = cos_ref[...]
    sa = sa_ref[...]
    sb = sb_ref[...]
    oq_ref[0] = _rope_rows(q_ref[0].astype(jnp.float32), cos, sa, sb, half
                           ).astype(oq_ref.dtype)
    ok_ref[0] = _rope_rows(k_ref[0].astype(jnp.float32), cos, sa, sb, half
                           ).astype(ok_ref.dtype)


def rope_pair(q, k, cos_t, sin_a, sin_b, d):
    B, L, W = q.shape
    spec3 = pl.BlockSpec((1, L, W), lambda b: (b, 0, 0))
    spec2 = pl.BlockSpec((L, W), lambda b: (0, 0))
    return pl.pallas_call(
        partial(_rope_pair_kernel, d // 2),
        grid=(B,),
        in_specs=[spec3, spec3, spec2, spec2, spec2],
        out_specs=[spec3, spec3],
        out_shape=(jax.ShapeDtypeStruct((B, L, W), jnp.float32),
                   jax.ShapeDtypeStruct((B, L, W), jnp.float32)),
        compiler_params=pltpu.CompilerParams(dimension_semantics=("parallel",)),
    )(q, k, cos_t, sin_a, sin_b)


# ----------------------------------------------------------------------------
# RoPE tables (llama3 scaling as hardcoded in _init_rope) — host-side glue
# ----------------------------------------------------------------------------
def _llama3_inv_freq(dim, theta, factor=32.0, low=1.0, high=4.0, orig=8192):
    inv = 1.0 / (theta ** (np.arange(0, dim, 2, dtype=np.float32) / dim))
    low_wl = orig / low
    high_wl = orig / high
    wavelen = 2.0 * np.pi / inv
    inv_l = np.where(wavelen > low_wl, inv / factor, inv)
    smooth = (orig / wavelen - low) / (high - low)
    smoothed = (1.0 - smooth) * inv_l / factor + smooth * inv_l
    is_med = (wavelen >= high_wl) & (wavelen <= low_wl)
    return np.where(is_med, smoothed, inv_l)


def rope_tables_tiled(dim, L, theta, n_seg):
    """cos + sign-masked sin tables tiled across n_seg heads: (L, n_seg*dim)."""
    inv = _llama3_inv_freq(dim, theta)
    pos = np.arange(L, dtype=np.float32)
    freqs = pos[:, None] * inv[None, :]
    emb = np.concatenate([freqs, freqs], axis=-1)       # (L, dim)
    cos = np.cos(emb)
    sin = np.sin(emb)
    cos_t = np.tile(cos, (1, n_seg))
    sin_t = np.tile(sin, (1, n_seg))
    half = dim // 2
    firsthalf = ((np.arange(n_seg * dim) % dim) < half).astype(np.float32)
    sin_a = -sin_t * firsthalf[None, :]                 # multiplies x[j+half]
    sin_b = sin_t * (1.0 - firsthalf)[None, :]          # multiplies x[j-half]
    return (jnp.asarray(cos_t, jnp.float32),
            jnp.asarray(sin_a, jnp.float32),
            jnp.asarray(sin_b, jnp.float32))


# ----------------------------------------------------------------------------
# Parameters (deterministic xavier-uniform init; biases/LN per _initialize_weights)
# ----------------------------------------------------------------------------
def xavier_uniform(key, fan_in, fan_out):
    a = math.sqrt(6.0 / (fan_in + fan_out))
    return jax.random.uniform(key, (fan_in, fan_out), jnp.float32, -a, a)


def init_params(key, E, R, intdim, N, H, dDash):
    ks = jax.random.split(key, 10)
    p = {}
    p["W_in"] = xavier_uniform(ks[0], E, R)
    p["Wq"] = xavier_uniform(ks[1], R, R)
    p["Wk"] = xavier_uniform(ks[2], R, R)
    p["Wv"] = xavier_uniform(ks[3], R, R)
    p["W_ffn1"] = xavier_uniform(ks[4], R, 2 * R)
    p["b_ffn1"] = jnp.zeros((2 * R,), jnp.float32)
    p["W_ffn2"] = xavier_uniform(ks[5], 2 * R, E)
    p["b_ffn2"] = jnp.zeros((E,), jnp.float32)
    p["g1"], p["beta1"] = jnp.ones((R,), jnp.float32), jnp.zeros((R,), jnp.float32)
    p["g2"], p["beta2"] = jnp.ones((E,), jnp.float32), jnp.zeros((E,), jnp.float32)
    p["g_imp"], p["beta_imp"] = jnp.ones((E,), jnp.float32), jnp.zeros((E,), jnp.float32)
    p["Wq_imp1"] = xavier_uniform(ks[6], E, intdim)
    p["Wq_imp2"] = xavier_uniform(ks[7], intdim, N * H * dDash)
    p["Wk_imp1"] = xavier_uniform(ks[8], E, intdim)
    p["Wk_imp2"] = xavier_uniform(ks[9], intdim, N * H * dDash)
    return p


# ----------------------------------------------------------------------------
# Forward (glue reshapes in JAX, all hot-path compute in fused Pallas kernels)
# ----------------------------------------------------------------------------
def token_importance_predictor_forward(params, hidden_states, *, num_heads,
                                        num_hidden_layers, dDash, rope_theta):
    B, L, E = hidden_states.shape
    H, N = num_heads, num_hidden_layers
    R = params["W_in"].shape[1]                 # hidden_size_reduced
    Dh = R // H                                 # attn_head_dim
    x2d = hidden_states.reshape(B * L, E).astype(jnp.float32)

    # ---- reduced self-attention branch (input proj, fused QKV, RoPE+attn) ----
    hr = linear(x2d, params["W_in"], out_dtype=jnp.bfloat16)          # bias-free
    W_qkv = jnp.concatenate([params["Wq"], params["Wk"], params["Wv"]], axis=1)
    qkv = linear(hr, W_qkv)                                           # (B*L, 3R)

    cos_a, sina_a, sinb_a = rope_tables_tiled(Dh, L, rope_theta, H)
    attn = rope_causal_attention(qkv.reshape(B, L, 3 * R),
                                 cos_a, sina_a, sinb_a, H, Dh)        # (B, L, R)
    attn2d = attn.reshape(B * L, R)

    # ---- norm1 fused into FFN1 (GELU); FFN2 fused with residual + norm2 ----
    h1 = fused_ln_linear(attn2d, params["g1"], params["beta1"], params["W_ffn1"],
                         b=params["b_ffn1"], act="gelu", out_dtype=jnp.bfloat16)
    hs = linear_residual_ln(h1, params["W_ffn2"], params["b_ffn2"], x2d,
                            params["g2"], params["beta2"])            # (B*L, E)

    # ---- norm_importance fused into the (q|k)-fused importance projection ----
    intdim = params["Wq_imp1"].shape[1]
    W_imp1 = jnp.concatenate([params["Wq_imp1"], params["Wk_imp1"]], axis=1)
    h_imp = fused_ln_linear(hs, params["g_imp"], params["beta_imp"], W_imp1,
                            act="silu", out_dtype=jnp.bfloat16)       # (B*L, 2*intdim)
    q_imp2d = linear(h_imp[:, :intdim], params["Wq_imp2"])            # (B*L, N*H*dDash)
    k_imp2d = linear(h_imp[:, intdim:], params["Wk_imp2"])

    # ---- RoPE on importance heads in the lane-dense [B, L, N*H*dDash] slab ----
    W = N * H * dDash
    cos_i, sina_i, sinb_i = rope_tables_tiled(dDash, L, rope_theta, N * H)
    q_r, k_r = rope_pair(q_imp2d.reshape(B, L, W), k_imp2d.reshape(B, L, W),
                         cos_i, sina_i, sinb_i, dDash)

    def to_out(t):  # (B,L,N,H,d) -> (B,N,H,L,d) -> reinterpret as (B*H, N, L, d)
        t = t.reshape(B, L, N, dDash * 0 + H, dDash).transpose(0, 2, 3, 1, 4)
        return t.reshape(B * H, N, L, dDash)

    return to_out(q_r), to_out(k_r)


# ----------------------------------------------------------------------------
if __name__ == "__main__":
    # small config: pred_hid_size=64, num_heads=2, num_hidden_layers=2,
    # dDash=16, intdim=64, attn_reduce_factor=2  ->  reduced=32, attn_head_dim=16
    B, L = 2, 8
    E, H, N = 64, 2, 2
    dDash, intdim, attn_reduce_factor = 16, 64, 2
    R = E // attn_reduce_factor
    rope_theta = 10000.0

    key = jax.random.PRNGKey(0)
    kp, kx = jax.random.split(key)
    params = init_params(kp, E, R, intdim, N, H, dDash)
    hidden_states = jax.random.normal(kx, (B, L, E), jnp.float32)

    fwd = jax.jit(partial(token_importance_predictor_forward,
                          num_heads=H, num_hidden_layers=N,
                          dDash=dDash, rope_theta=rope_theta))
    q_imp, k_imp = fwd(params, hidden_states)
    jax.block_until_ready((q_imp, k_imp))

    assert q_imp.shape == (B * H, N, L, dDash)
    assert k_imp.shape == (B * H, N, L, dDash)
    assert bool(jnp.all(jnp.isfinite(q_imp))) and bool(jnp.all(jnp.isfinite(k_imp)))
    print("KERNEL_OK")
</pallas_src>

<mosaic_0001>
module attributes {stable_mosaic.version = 11 : i64} {
  func.func @_matmul_kernel(%arg0: i32, %arg1: i32, %arg2: i32, %arg3: memref<16x64xf32, #tpu.memory_space<vmem>>, %arg4: memref<64x32xbf16, #tpu.memory_space<vmem>>, %arg5: memref<16x32xbf16, #tpu.memory_space<vmem>>, %arg6: memref<16x32xf32, #tpu.memory_space<vmem>>) attributes {dimension_semantics = [#tpu.dimension_semantics<parallel>, #tpu.dimension_semantics<parallel>, #tpu.dimension_semantics<arbitrary>], iteration_bounds = array<i64: 1, 1, 1>, scalar_prefetch = 0 : i64, scratch_operands = 1 : i64, tpu.core_type = #tpu.core_type<tc>, window_params = [{transform_indices = @transform_0, window_bounds = array<i64: 16, 64>}, {transform_indices = @transform_1, window_bounds = array<i64: 64, 32>}, {transform_indices = @transform_2, window_bounds = array<i64: 16, 32>}]} {
    %c0_i32 = arith.constant 0 : i32
    %0 = arith.cmpi eq, %arg2, %c0_i32 : i32
    %1 = arith.extui %0 : i1 to i32
    %c0_i32_0 = arith.constant 0 : i32
    %2 = arith.cmpi ne, %1, %c0_i32_0 : i32
    scf.if %2 {
      %cst_10 = arith.constant 0.000000e+00 : f32
      %13 = vector.broadcast %cst_10 : f32 to vector<16x32xf32>
      %c0_11 = arith.constant 0 : index
      %c0_12 = arith.constant 0 : index
      %14 = vector.load %arg6[%c0_11, %c0_12] : memref<16x32xf32, #tpu.memory_space<vmem>>, vector<16x32xf32>
      tpu.vector_store %arg6[%c0_11, %c0_12], %13 {strides = array<i32>} : memref<16x32xf32, #tpu.memory_space<vmem>>, vector<16x32xf32>,
    } else {
    }
    %c0 = arith.constant 0 : index
    %c0_1 = arith.constant 0 : index
    %3 = vector.load %arg6[%c0, %c0_1] : memref<16x32xf32, #tpu.memory_space<vmem>>, vector<16x32xf32>
    %c0_2 = arith.constant 0 : index
    %c0_3 = arith.constant 0 : index
    %4 = vector.load %arg3[%c0_2, %c0_3] : memref<16x64xf32, #tpu.memory_space<vmem>>, vector<16x64xf32>
    %5 = arith.truncf %4 : vector<16x64xf32> to vector<16x64xbf16>
    %c0_4 = arith.constant 0 : index
    %c0_5 = arith.constant 0 : index
    %6 = vector.load %arg4[%c0_4, %c0_5] : memref<64x32xbf16, #tpu.memory_space<vmem>>, vector<64x32xbf16>
    %cst = arith.constant dense<0.000000e+00> : vector<16x32xf32>
    %7 = tpu.matmul %5, %6, %cst {dimension_numbers = #tpu.dot_dimension_numbers<[1], [0], [0], [1], [0, 0, 1, 1], [], []>} : vector<16x64xbf16>, vector<64x32xbf16>, vector<16x32xf32> -> vector<16x32xf32>
    %8 = arith.addf %3, %7 : vector<16x32xf32>
    %c0_6 = arith.constant 0 : index
    %c0_7 = arith.constant 0 : index
    %9 = vector.load %arg6[%c0_6, %c0_7] : memref<16x32xf32, #tpu.memory_space<vmem>>, vector<16x32xf32>
    tpu.vector_store %arg6[%c0_6, %c0_7], %8 {strides = array<i32>} : memref<16x32xf32, #tpu.memory_space<vmem>>, vector<16x32xf32>,
    %c0_i32_8 = arith.constant 0 : i32
    %10 = arith.cmpi eq, %arg2, %c0_i32_8 : i32
    %11 = arith.extui %10 : i1 to i32
    %c0_i32_9 = arith.constant 0 : i32
    %12 = arith.cmpi ne, %11, %c0_i32_9 : i32
    scf.if %12 {
      %c0_10 = arith.constant 0 : index
      %c0_11 = arith.constant 0 : index
      %13 = vector.load %arg6[%c0_10, %c0_11] : memref<16x32xf32, #tpu.memory_space<vmem>>, vector<16x32xf32>
      %14 = arith.truncf %13 : vector<16x32xf32> to vector<16x32xbf16>
      %c0_12 = arith.constant 0 : index
      %c0_13 = arith.constant 0 : index
      %15 = vector.load %arg5[%c0_12, %c0_13] : memref<16x32xbf16, #tpu.memory_space<vmem>>, vector<16x32xbf16>
      tpu.vector_store %arg5[%c0_12, %c0_13], %14 {strides = array<i32>} : memref<16x32xbf16, #tpu.memory_space<vmem>>, vector<16x32xbf16>,
    } else {
    }
    return
  }
  func.func @transform_0(%arg0: i32, %arg1: i32, %arg2: i32) -> (i32, i32) {
    %c0_i32 = arith.constant 0 : i32
    return %arg0, %arg2 : i32, i32
  }
  func.func @transform_1(%arg0: i32, %arg1: i32, %arg2: i32) -> (i32, i32) {
    %c0_i32 = arith.constant 0 : i32
    return %arg2, %arg1 : i32, i32
  }
  func.func @transform_2(%arg0: i32, %arg1: i32, %arg2: i32) -> (i32, i32) {
    %c0_i32 = arith.constant 0 : i32
    return %arg0, %arg1 : i32, i32
  }
}

module attributes {stable_mosaic.version = 11 : i64} {
  func.func @_matmul_kernel(%arg0: i32, %arg1: i32, %arg2: i32, %arg3: memref<16x32xbf16, #tpu.memory_space<vmem>>, %arg4: memref<32x96xbf16, #tpu.memory_space<vmem>>, %arg5: memref<16x96xf32, #tpu.memory_space<vmem>>, %arg6: memref<16x96xf32, #tpu.memory_space<vmem>>) attributes {dimension_semantics = [#tpu.dimension_semantics<parallel>, #tpu.dimension_semantics<parallel>, #tpu.dimension_semantics<arbitrary>], iteration_bounds = array<i64: 1, 1, 1>, scalar_prefetch = 0 : i64, scratch_operands = 1 : i64, tpu.core_type = #tpu.core_type<tc>, window_params = [{transform_indices = @transform_0, window_bounds = array<i64: 16, 32>}, {transform_indices = @transform_1, window_bounds = array<i64: 32, 96>}, {transform_indices = @transform_2, window_bounds = array<i64: 16, 96>}]} {
    %c0_i32 = arith.constant 0 : i32
    %0 = arith.cmpi eq, %arg2, %c0_i32 : i32
    %1 = arith.extui %0 : i1 to i32
    %c0_i32_0 = arith.constant 0 : i32
    %2 = arith.cmpi ne, %1, %c0_i32_0 : i32
    scf.if %2 {
      %cst_10 = arith.constant 0.000000e+00 : f32
      %12 = vector.broadcast %cst_10 : f32 to vector<16x96xf32>
      %c0_11 = arith.constant 0 : index
      %c0_12 = arith.constant 0 : index
      %13 = vector.load %arg6[%c0_11, %c0_12] : memref<16x96xf32, #tpu.memory_space<vmem>>, vector<16x96xf32>
      tpu.vector_store %arg6[%c0_11, %c0_12], %12 {strides = array<i32>} : memref<16x96xf32, #tpu.memory_space<vmem>>, vector<16x96xf32>,
    } else {
    }
    %c0 = arith.constant 0 : index
    %c0_1 = arith.constant 0 : index
    %3 = vector.load %arg6[%c0, %c0_1] : memref<16x96xf32, #tpu.memory_space<vmem>>, vector<16x96xf32>
    %c0_2 = arith.constant 0 : index
    %c0_3 = arith.constant 0 : index
    %4 = vector.load %arg3[%c0_2, %c0_3] : memref<16x32xbf16, #tpu.memory_space<vmem>>, vector<16x32xbf16>
    %c0_4 = arith.constant 0 : index
    %c0_5 = arith.constant 0 : index
    %5 = vector.load %arg4[%c0_4, %c0_5] : memref<32x96xbf16, #tpu.memory_space<vmem>>, vector<32x96xbf16>
    %cst = arith.constant dense<0.000000e+00> : vector<16x96xf32>
    %6 = tpu.matmul %4, %5, %cst {dimension_numbers = #tpu.dot_dimension_numbers<[1], [0], [0], [1], [0, 0, 1, 1], [], []>} : vector<16x32xbf16>, vector<32x96xbf16>, vector<16x96xf32> -> vector<16x96xf32>
    %7 = arith.addf %3, %6 : vector<16x96xf32>
    %c0_6 = arith.constant 0 : index
    %c0_7 = arith.constant 0 : index
    %8 = vector.load %arg6[%c0_6, %c0_7] : memref<16x96xf32, #tpu.memory_space<vmem>>, vector<16x96xf32>
    tpu.vector_store %arg6[%c0_6, %c0_7], %7 {strides = array<i32>} : memref<16x96xf32, #tpu.memory_space<vmem>>, vector<16x96xf32>,
    %c0_i32_8 = arith.constant 0 : i32
    %9 = arith.cmpi eq, %arg2, %c0_i32_8 : i32
    %10 = arith.extui %9 : i1 to i32
    %c0_i32_9 = arith.constant 0 : i32
    %11 = arith.cmpi ne, %10, %c0_i32_9 : i32
    scf.if %11 {
      %c0_10 = arith.constant 0 : index
      %c0_11 = arith.constant 0 : index
      %12 = vector.load %arg6[%c0_10, %c0_11] : memref<16x96xf32, #tpu.memory_space<vmem>>, vector<16x96xf32>
      %c0_12 = arith.constant 0 : index
      %c0_13 = arith.constant 0 : index
      %13 = vector.load %arg5[%c0_12, %c0_13] : memref<16x96xf32, #tpu.memory_space<vmem>>, vector<16x96xf32>
      tpu.vector_store %arg5[%c0_12, %c0_13], %12 {strides = array<i32>} : memref<16x96xf32, #tpu.memory_space<vmem>>, vector<16x96xf32>,
    } else {
    }
    return
  }
  func.func @transform_0(%arg0: i32, %arg1: i32, %arg2: i32) -> (i32, i32) {
    %c0_i32 = arith.constant 0 : i32
    return %arg0, %arg2 : i32, i32
  }
  func.func @transform_1(%arg0: i32, %arg1: i32, %arg2: i32) -> (i32, i32) {
    %c0_i32 = arith.constant 0 : i32
    return %arg2, %arg1 : i32, i32
  }
  func.func @transform_2(%arg0: i32, %arg1: i32, %arg2: i32) -> (i32, i32) {
    %c0_i32 = arith.constant 0 : i32
    return %arg0, %arg1 : i32, i32
  }
}

module attributes {stable_mosaic.version = 11 : i64} {
  func.func @_attn_kernel(%arg0: i32, %arg1: memref<1x8x96xf32, #tpu.memory_space<vmem>>, %arg2: memref<8x32xf32, #tpu.memory_space<vmem>>, %arg3: memref<8x32xf32, #tpu.memory_space<vmem>>, %arg4: memref<8x32xf32, #tpu.memory_space<vmem>>, %arg5: memref<1x8x32xf32, #tpu.memory_space<vmem>>) attributes {dimension_semantics = [#tpu.dimension_semantics<parallel>], iteration_bounds = array<i64: 2>, scalar_prefetch = 0 : i64, scratch_operands = 0 : i64, tpu.core_type = #tpu.core_type<tc>, window_params = [{transform_indices = @transform_0, window_bounds = array<i64: 1, 8, 96>}, {pipeline_mode = #tpu.pipeline_mode<synchronous>, transform_indices = @transform_1, window_bounds = array<i64: 8, 32>}, {pipeline_mode = #tpu.pipeline_mode<synchronous>, transform_indices = @transform_2, window_bounds = array<i64: 8, 32>}, {pipeline_mode = #tpu.pipeline_mode<synchronous>, transform_indices = @transform_3, window_bounds = array<i64: 8, 32>}, {transform_indices = @transform_4, window_bounds = array<i64: 1, 8, 32>}]} {
    %c0 = arith.constant 0 : index
    %c0_0 = arith.constant 0 : index
    %c0_1 = arith.constant 0 : index
    %0 = vector.load %arg1[%c0, %c0_0, %c0_1] : memref<1x8x96xf32, #tpu.memory_space<vmem>>, vector<1x8x96xf32>
    %1 = vector.shape_cast %0 : vector<1x8x96xf32> to vector<8x96xf32>
    %c0_2 = arith.constant 0 : index
    %c0_3 = arith.constant 0 : index
    %2 = vector.load %arg2[%c0_2, %c0_3] : memref<8x32xf32, #tpu.memory_space<vmem>>, vector<8x32xf32>
    %c0_4 = arith.constant 0 : index
    %c0_5 = arith.constant 0 : index
    %3 = vector.load %arg3[%c0_4, %c0_5] : memref<8x32xf32, #tpu.memory_space<vmem>>, vector<8x32xf32>
    %c0_6 = arith.constant 0 : index
    %c0_7 = arith.constant 0 : index
    %4 = vector.load %arg4[%c0_6, %c0_7] : memref<8x32xf32, #tpu.memory_space<vmem>>, vector<8x32xf32>
    %5 = vector.extract_strided_slice %1 {offsets = [0, 0], sizes = [8, 32], strides = [1, 1]} : vector<8x96xf32> to vector<8x32xf32>
    %6 = vector.extract_strided_slice %5 {offsets = [0, 8], sizes = [8, 24], strides = [1, 1]} : vector<8x32xf32> to vector<8x24xf32>
    %7 = vector.extract_strided_slice %5 {offsets = [0, 0], sizes = [8, 8], strides = [1, 1]} : vector<8x32xf32> to vector<8x8xf32>
    %8 = tpu.concatenate %6, %7 in 1 : vector<8x24xf32>, vector<8x8xf32> -> vector<8x32xf32>
    %9 = vector.extract_strided_slice %5 {offsets = [0, 24], sizes = [8, 8], strides = [1, 1]} : vector<8x32xf32> to vector<8x8xf32>
    %10 = vector.extract_strided_slice %5 {offsets = [0, 0], sizes = [8, 24], strides = [1, 1]} : vector<8x32xf32> to vector<8x24xf32>
    %11 = tpu.concatenate %9, %10 in 1 : vector<8x8xf32>, vector<8x24xf32> -> vector<8x32xf32>
    %12 = arith.mulf %5, %2 : vector<8x32xf32>
    %13 = arith.mulf %8, %3 : vector<8x32xf32>
    %14 = arith.addf %12, %13 : vector<8x32xf32>
    %15 = arith.mulf %11, %4 : vector<8x32xf32>
    %16 = arith.addf %14, %15 : vector<8x32xf32>
    %17 = vector.extract_strided_slice %1 {offsets = [0, 32], sizes = [8, 32], strides = [1, 1]} : vector<8x96xf32> to vector<8x32xf32>
    %18 = vector.extract_strided_slice %17 {offsets = [0, 8], sizes = [8, 24], strides = [1, 1]} : vector<8x32xf32> to vector<8x24xf32>
    %19 = vector.extract_strided_slice %17 {offsets = [0, 0], sizes = [8, 8], strides = [1, 1]} : vector<8x32xf32> to vector<8x8xf32>
    %20 = tpu.concatenate %18, %19 in 1 : vector<8x24xf32>, vector<8x8xf32> -> vector<8x32xf32>
    %21 = vector.extract_strided_slice %17 {offsets = [0, 24], sizes = [8, 8], strides = [1, 1]} : vector<8x32xf32> to vector<8x8xf32>
    %22 = vector.extract_strided_slice %17 {offsets = [0, 0], sizes = [8, 24], strides = [1, 1]} : vector<8x32xf32> to vector<8x24xf32>
    %23 = tpu.concatenate %21, %22 in 1 : vector<8x8xf32>, vector<8x24xf32> -> vector<8x32xf32>
    %24 = arith.mulf %17, %2 : vector<8x32xf32>
    %25 = arith.mulf %20, %3 : vector<8x32xf32>
    %26 = arith.addf %24, %25 : vector<8x32xf32>
    %27 = arith.mulf %23, %4 : vector<8x32xf32>
    %28 = arith.addf %26, %27 : vector<8x32xf32>
    %29 = vector.extract_strided_slice %1 {offsets = [0, 64], sizes = [8, 32], strides = [1, 1]} : vector<8x96xf32> to vector<8x32xf32>
    %30 = vector.extract_strided_slice %16 {offsets = [0, 0], sizes = [8, 16], strides = [1, 1]} : vector<8x32xf32> to vector<8x16xf32>
    %31 = vector.shape_cast %30 : vector<8x16xf32> to vector<1x8x16xf32>
    %32 = vector.extract_strided_slice %16 {offsets = [0, 16], sizes = [8, 16], strides = [1, 1]} : vector<8x32xf32> to vector<8x16xf32>
    %33 = vector.shape_cast %32 : vector<8x16xf32> to vector<1x8x16xf32>
    %34 = tpu.concatenate %31, %33 in 0 : vector<1x8x16xf32>, vector<1x8x16xf32> -> vector<2x8x16xf32>
    %35 = vector.extract_strided_slice %28 {offsets = [0, 0], sizes = [8, 16], strides = [1, 1]} : vector<8x32xf32> to vector<8x16xf32>
    %36 = vector.shape_cast %35 : vector<8x16xf32> to vector<1x8x16xf32>
    %37 = vector.extract_strided_slice %28 {offsets = [0, 16], sizes = [8, 16], strides = [1, 1]} : vector<8x32xf32> to vector<8x16xf32>
    %38 = vector.shape_cast %37 : vector<8x16xf32> to vector<1x8x16xf32>
    %39 = tpu.concatenate %36, %38 in 0 : vector<1x8x16xf32>, vector<1x8x16xf32> -> vector<2x8x16xf32>
    %40 = vector.extract_strided_slice %29 {offsets = [0, 0], sizes = [8, 16], strides = [1, 1]} : vector<8x32xf32> to vector<8x16xf32>
    %41 = vector.shape_cast %40 : vector<8x16xf32> to vector<1x8x16xf32>
    %42 = vector.extract_strided_slice %29 {offsets = [0, 16], sizes = [8, 16], strides = [1, 1]} : vector<8x32xf32> to vector<8x16xf32>
    %43 = vector.shape_cast %42 : vector<8x16xf32> to vector<1x8x16xf32>
    %44 = tpu.concatenate %41, %43 in 0 : vector<1x8x16xf32>, vector<1x8x16xf32> -> vector<2x8x16xf32>
    %45 = arith.truncf %34 : vector<2x8x16xf32> to vector<2x8x16xbf16>
    %46 = arith.truncf %39 : vector<2x8x16xf32> to vector<2x8x16xbf16>
    "tpu.trace_start"() <{level = 10 : i32, message = "hqd,hkd->hqk"}> : () -> ()
    %cst = arith.constant dense<0.000000e+00> : vector<2x8x8xf32>
    %47 = tpu.matmul %45, %46, %cst {dimension_numbers = #tpu.dot_dimension_numbers<[2], [2], [1], [1], [0, 0, 0, 1, 1, 1], [0], [0]>} : vector<2x8x16xbf16>, vector<2x8x16xbf16>, vector<2x8x8xf32> -> vector<2x8x8xf32>
    "tpu.trace_stop"() : () -> ()
    %cst_8 = arith.constant 2.500000e-01 : f32
    %48 = vector.broadcast %cst_8 : f32 to vector<2x8x8xf32>
    %49 = arith.mulf %47, %48 : vector<2x8x8xf32>
    %50 = tpu.iota {dimensions = array<i32: 1>} : vector<2x8x8xi32>
    %51 = tpu.iota {dimensions = array<i32: 2>} : vector<2x8x8xi32>
    %52 = arith.cmpi sle, %51, %50 : vector<2x8x8xi32>
    %cst_9 = arith.constant -1.000000e+30 : f32
    %53 = vector.broadcast %cst_9 : f32 to vector<2x8x8xf32>
    %54 = arith.select %52, %49, %53 : vector<2x8x8xi1>, vector<2x8x8xf32>
    %cst_10 = arith.constant dense<0xFF800000> : vector<2x8xf32>
    %55 = vector.multi_reduction <maximumf>, %54, %cst_10 [2] : vector<2x8x8xf32> to vector<2x8xf32>
    %56 = vector.shape_cast %55 : vector<2x8xf32> to vector<2x8x1xf32>
    %57 = vector.broadcast %56 : vector<2x8x1xf32> to vector<2x8x8xf32>
    %58 = arith.subf %54, %57 : vector<2x8x8xf32>
    %59 = math.exp %58 : vector<2x8x8xf32>
    %cst_11 = arith.constant dense<0.000000e+00> : vector<2x8xf32>
    %60 = vector.multi_reduction <add>, %59, %cst_11 [2] : vector<2x8x8xf32> to vector<2x8xf32>
    %61 = vector.shape_cast %60 : vector<2x8xf32> to vector<2x8x1xf32>
    %62 = tpu.reciprocal %61 {approx = true} : vector<2x8x1xf32> -> vector<2x8x1xf32>
    %63 = vector.broadcast %62 : vector<2x8x1xf32> to vector<2x8x8xf32>
    %64 = arith.mulf %59, %63 : vector<2x8x8xf32>
    %65 = arith.truncf %64 : vector<2x8x8xf32> to vector<2x8x8xbf16>
    %66 = arith.truncf %44 : vector<2x8x16xf32> to vector<2x8x16xbf16>
    "tpu.trace_start"() <{level = 10 : i32, message = "hqk,hkd->hqd"}> : () -> ()
    %cst_12 = arith.constant dense<0.000000e+00> : vector<2x8x16xf32>
    %67 = tpu.matmul %65, %66, %cst_12 {dimension_numbers = #tpu.dot_dimension_numbers<[2], [1], [1], [2], [0, 0, 0, 1, 1, 2], [0], [0]>} : vector<2x8x8xbf16>, vector<2x8x16xbf16>, vector<2x8x16xf32> -> vector<2x8x16xf32>
    "tpu.trace_stop"() : () -> ()
    %68 = vector.extract_strided_slice %67 {offsets = [0, 0, 0], sizes = [1, 8, 16], strides = [1, 1, 1]} : vector<2x8x16xf32> to vector<1x8x16xf32>
    %69 = vector.shape_cast %68 : vector<1x8x16xf32> to vector<8x16xf32>
    %70 = vector.extract_strided_slice %67 {offsets = [1, 0, 0], sizes = [1, 8, 16], strides = [1, 1, 1]} : vector<2x8x16xf32> to vector<1x8x16xf32>
    %71 = vector.shape_cast %70 : vector<1x8x16xf32> to vector<8x16xf32>
    %72 = tpu.concatenate %69, %71 in 1 : vector<8x16xf32>, vector<8x16xf32> -> vector<8x32xf32>
    %c0_13 = arith.constant 0 : index
    %c0_14 = arith.constant 0 : index
    %c0_15 = arith.constant 0 : index
    %73 = vector.load %arg5[%c0_13, %c0_14, %c0_15] : memref<1x8x32xf32, #tpu.memory_space<vmem>>, vector<1x8x32xf32>
    %74 = vector.shape_cast %73 : vector<1x8x32xf32> to vector<8x32xf32>
    %75 = vector.shape_cast %72 : vector<8x32xf32> to vector<1x8x32xf32>
    tpu.vector_store %arg5[%c0_13, %c0_14, %c0_15], %75 {strides = array<i32>} : memref<1x8x32xf32, #tpu.memory_space<vmem>>, vector<1x8x32xf32>,
    return
  }
  func.func @transform_0(%arg0: i32) -> (i32, i32, i32) {
    %c0_i32 = arith.constant 0 : i32
    %c0_i32_0 = arith.constant 0 : i32
    %c0_i32_1 = arith.constant 0 : i32
    return %arg0, %c0_i32, %c0_i32_0 : i32, i32, i32
  }
  func.func @transform_1(%arg0: i32) -> (i32, i32) {
    %c0_i32 = arith.constant 0 : i32
    %c0_i32_0 = arith.constant 0 : i32
    %c0_i32_1 = arith.constant 0 : i32
    return %c0_i32, %c0_i32_0 : i32, i32
  }
  func.func @transform_2(%arg0: i32) -> (i32, i32) {
    %c0_i32 = arith.constant 0 : i32
    %c0_i32_0 = arith.constant 0 : i32
    %c0_i32_1 = arith.constant 0 : i32
    return %c0_i32, %c0_i32_0 : i32, i32
  }
  func.func @transform_3(%arg0: i32) -> (i32, i32) {
    %c0_i32 = arith.constant 0 : i32
    %c0_i32_0 = arith.constant 0 : i32
    %c0_i32_1 = arith.constant 0 : i32
    return %c0_i32, %c0_i32_0 : i32, i32
  }
  func.func @transform_4(%arg0: i32) -> (i32, i32, i32) {
    %c0_i32 = arith.constant 0 : i32
    %c0_i32_0 = arith.constant 0 : i32
    %c0_i32_1 = arith.constant 0 : i32
    return %arg0, %c0_i32, %c0_i32_0 : i32, i32, i32
  }
}

module attributes {stable_mosaic.version = 11 : i64} {
  func.func @_ln_linear_kernel(%arg0: i32, %arg1: i32, %arg2: memref<16x32xf32, #tpu.memory_space<vmem>>, %arg3: memref<1x32xf32, #tpu.memory_space<vmem>>, %arg4: memref<1x32xf32, #tpu.memory_space<vmem>>, %arg5: memref<32x64xbf16, #tpu.memory_space<vmem>>, %arg6: memref<1x64xf32, #tpu.memory_space<vmem>>, %arg7: memref<16x64xbf16, #tpu.memory_space<vmem>>) attributes {dimension_semantics = [#tpu.dimension_semantics<parallel>, #tpu.dimension_semantics<parallel>], iteration_bounds = array<i64: 1, 1>, scalar_prefetch = 0 : i64, scratch_operands = 0 : i64, tpu.core_type = #tpu.core_type<tc>, window_params = [{transform_indices = @transform_0, window_bounds = array<i64: 16, 32>}, {pipeline_mode = #tpu.pipeline_mode<synchronous>, transform_indices = @transform_1, window_bounds = array<i64: 1, 32>}, {pipeline_mode = #tpu.pipeline_mode<synchronous>, transform_indices = @transform_2, window_bounds = array<i64: 1, 32>}, {transform_indices = @transform_3, window_bounds = array<i64: 32, 64>}, {transform_indices = @transform_4, window_bounds = array<i64: 1, 64>}, {transform_indices = @transform_5, window_bounds = array<i64: 16, 64>}]} {
    %c0 = arith.constant 0 : index
    %c0_0 = arith.constant 0 : index
    %0 = vector.load %arg2[%c0, %c0_0] : memref<16x32xf32, #tpu.memory_space<vmem>>, vector<16x32xf32>
    %cst = arith.constant dense<0.000000e+00> : vector<16xf32>
    %1 = vector.multi_reduction <add>, %0, %cst [1] : vector<16x32xf32> to vector<16xf32>
    %2 = vector.shape_cast %1 : vector<16xf32> to vector<16x1xf32>
    %cst_1 = arith.constant 3.200000e+01 : f32
    %3 = vector.broadcast %cst_1 : f32 to vector<16x1xf32>
    %4 = arith.divf %2, %3 : vector<16x1xf32>
    %5 = vector.broadcast %4 : vector<16x1xf32> to vector<16x32xf32>
    %6 = arith.subf %0, %5 : vector<16x32xf32>
    %7 = arith.mulf %6, %6 : vector<16x32xf32>
    %cst_2 = arith.constant dense<0.000000e+00> : vector<16xf32>
    %8 = vector.multi_reduction <add>, %7, %cst_2 [1] : vector<16x32xf32> to vector<16xf32>
    %9 = vector.shape_cast %8 : vector<16xf32> to vector<16x1xf32>
    %cst_3 = arith.constant 3.200000e+01 : f32
    %10 = vector.broadcast %cst_3 : f32 to vector<16x1xf32>
    %11 = arith.divf %9, %10 : vector<16x1xf32>
    %12 = vector.broadcast %4 : vector<16x1xf32> to vector<16x32xf32>
    %13 = arith.subf %0, %12 : vector<16x32xf32>
    %cst_4 = arith.constant 9.99999974E-6 : f32
    %14 = vector.broadcast %cst_4 : f32 to vector<16x1xf32>
    %15 = arith.addf %11, %14 : vector<16x1xf32>
    %16 = math.rsqrt %15 : vector<16x1xf32>
    %17 = vector.broadcast %16 : vector<16x1xf32> to vector<16x32xf32>
    %18 = arith.mulf %13, %17 : vector<16x32xf32>
    %c0_5 = arith.constant 0 : index
    %c0_6 = arith.constant 0 : index
    %19 = vector.load %arg3[%c0_5, %c0_6] : memref<1x32xf32, #tpu.memory_space<vmem>>, vector<1x32xf32>
    %20 = vector.broadcast %19 : vector<1x32xf32> to vector<16x32xf32>
    %21 = arith.mulf %18, %20 : vector<16x32xf32>
    %c0_7 = arith.constant 0 : index
    %c0_8 = arith.constant 0 : index
    %22 = vector.load %arg4[%c0_7, %c0_8] : memref<1x32xf32, #tpu.memory_space<vmem>>, vector<1x32xf32>
    %23 = vector.broadcast %22 : vector<1x32xf32> to vector<16x32xf32>
    %24 = arith.addf %21, %23 : vector<16x32xf32>
    %25 = arith.truncf %24 : vector<16x32xf32> to vector<16x32xbf16>
    %c0_9 = arith.constant 0 : index
    %c0_10 = arith.constant 0 : index
    %26 = vector.load %arg5[%c0_9, %c0_10] : memref<32x64xbf16, #tpu.memory_space<vmem>>, vector<32x64xbf16>
    %cst_11 = arith.constant dense<0.000000e+00> : vector<16x64xf32>
    %27 = tpu.matmul %25, %26, %cst_11 {dimension_numbers = #tpu.dot_dimension_numbers<[1], [0], [0], [1], [0, 0, 1, 1], [], []>} : vector<16x32xbf16>, vector<32x64xbf16>, vector<16x64xf32> -> vector<16x64xf32>
    %c0_12 = arith.constant 0 : index
    %c0_13 = arith.constant 0 : index
    %28 = vector.load %arg6[%c0_12, %c0_13] : memref<1x64xf32, #tpu.memory_space<vmem>>, vector<1x64xf32>
    %29 = vector.broadcast %28 : vector<1x64xf32> to vector<16x64xf32>
    %30 = arith.addf %27, %29 : vector<16x64xf32>
    %cst_14 = arith.constant 5.000000e-01 : f32
    %31 = vector.broadcast %cst_14 : f32 to vector<16x64xf32>
    %32 = arith.mulf %31, %30 : vector<16x64xf32>
    %cst_15 = arith.constant 0.707106769 : f32
    %33 = vector.broadcast %cst_15 : f32 to vector<16x64xf32>
    %34 = arith.mulf %30, %33 : vector<16x64xf32>
    %35 = math.erf %34 : vector<16x64xf32>
    %cst_16 = arith.constant 1.000000e+00 : f32
    %36 = vector.broadcast %cst_16 : f32 to vector<16x64xf32>
    %37 = arith.addf %36, %35 : vector<16x64xf32>
    %38 = arith.mulf %32, %37 : vector<16x64xf32>
    %39 = arith.truncf %38 : vector<16x64xf32> to vector<16x64xbf16>
    %c0_17 = arith.constant 0 : index
    %c0_18 = arith.constant 0 : index
    %40 = vector.load %arg7[%c0_17, %c0_18] : memref<16x64xbf16, #tpu.memory_space<vmem>>, vector<16x64xbf16>
    tpu.vector_store %arg7[%c0_17, %c0_18], %39 {strides = array<i32>} : memref<16x64xbf16, #tpu.memory_space<vmem>>, vector<16x64xbf16>,
    return
  }
  func.func @transform_0(%arg0: i32, %arg1: i32) -> (i32, i32) {
    %c0_i32 = arith.constant 0 : i32
    %c0_i32_0 = arith.constant 0 : i32
    return %arg0, %c0_i32 : i32, i32
  }
  func.func @transform_1(%arg0: i32, %arg1: i32) -> (i32, i32) {
    %c0_i32 = arith.constant 0 : i32
    %c0_i32_0 = arith.constant 0 : i32
    %c0_i32_1 = arith.constant 0 : i32
    return %c0_i32, %c0_i32_0 : i32, i32
  }
  func.func @transform_2(%arg0: i32, %arg1: i32) -> (i32, i32) {
    %c0_i32 = arith.constant 0 : i32
    %c0_i32_0 = arith.constant 0 : i32
    %c0_i32_1 = arith.constant 0 : i32
    return %c0_i32, %c0_i32_0 : i32, i32
  }
  func.func @transform_3(%arg0: i32, %arg1: i32) -> (i32, i32) {
    %c0_i32 = arith.constant 0 : i32
    %c0_i32_0 = arith.constant 0 : i32
    return %c0_i32, %arg1 : i32, i32
  }
  func.func @transform_4(%arg0: i32, %arg1: i32) -> (i32, i32) {
    %c0_i32 = arith.constant 0 : i32
    %c0_i32_0 = arith.constant 0 : i32
    return %c0_i32, %arg1 : i32, i32
  }
  func.func @transform_5(%arg0: i32, %arg1: i32) -> (i32, i32) {
    %c0_i32 = arith.constant 0 : i32
    return %arg0, %arg1 : i32, i32
  }
}

module attributes {stable_mosaic.version = 11 : i64} {
  func.func @_linear_res_ln_kernel(%arg0: i32, %arg1: i32, %arg2: memref<16x64xbf16, #tpu.memory_space<vmem>>, %arg3: memref<64x64xbf16, #tpu.memory_space<vmem>>, %arg4: memref<1x64xf32, #tpu.memory_space<vmem>>, %arg5: memref<16x64xf32, #tpu.memory_space<vmem>>, %arg6: memref<1x64xf32, #tpu.memory_space<vmem>>, %arg7: memref<1x64xf32, #tpu.memory_space<vmem>>, %arg8: memref<16x64xf32, #tpu.memory_space<vmem>>, %arg9: memref<16x64xf32, #tpu.memory_space<vmem>>) attributes {dimension_semantics = [#tpu.dimension_semantics<parallel>, #tpu.dimension_semantics<arbitrary>], iteration_bounds = array<i64: 1, 1>, scalar_prefetch = 0 : i64, scratch_operands = 1 : i64, tpu.core_type = #tpu.core_type<tc>, window_params = [{transform_indices = @transform_0, window_bounds = array<i64: 16, 64>}, {transform_indices = @transform_1, window_bounds = array<i64: 64, 64>}, {pipeline_mode = #tpu.pipeline_mode<synchronous>, transform_indices = @transform_2, window_bounds = array<i64: 1, 64>}, {transform_indices = @transform_3, window_bounds = array<i64: 16, 64>}, {pipeline_mode = #tpu.pipeline_mode<synchronous>, transform_indices = @transform_4, window_bounds = array<i64: 1, 64>}, {pipeline_mode = #tpu.pipeline_mode<synchronous>, transform_indices = @transform_5, window_bounds = array<i64: 1, 64>}, {transform_indices = @transform_6, window_bounds = array<i64: 16, 64>}]} {
    %c0_i32 = arith.constant 0 : i32
    %0 = arith.cmpi eq, %arg1, %c0_i32 : i32
    %1 = arith.extui %0 : i1 to i32
    %c0_i32_0 = arith.constant 0 : i32
    %2 = arith.cmpi ne, %1, %c0_i32_0 : i32
    scf.if %2 {
      %cst_10 = arith.constant 0.000000e+00 : f32
      %12 = vector.broadcast %cst_10 : f32 to vector<16x64xf32>
      %c0_11 = arith.constant 0 : index
      %c0_12 = arith.constant 0 : index
      %13 = vector.load %arg9[%c0_11, %c0_12] : memref<16x64xf32, #tpu.memory_space<vmem>>, vector<16x64xf32>
      tpu.vector_store %arg9[%c0_11, %c0_12], %12 {strides = array<i32>} : memref<16x64xf32, #tpu.memory_space<vmem>>, vector<16x64xf32>,
    } else {
    }
    %c0 = arith.constant 0 : index
    %c0_1 = arith.constant 0 : index
    %3 = vector.load %arg9[%c0, %c0_1] : memref<16x64xf32, #tpu.memory_space<vmem>>, vector<16x64xf32>
    %c0_2 = arith.constant 0 : index
    %c0_3 = arith.constant 0 : index
    %4 = vector.load %arg2[%c0_2, %c0_3] : memref<16x64xbf16, #tpu.memory_space<vmem>>, vector<16x64xbf16>
    %c0_4 = arith.constant 0 : index
    %c0_5 = arith.constant 0 : index
    %5 = vector.load %arg3[%c0_4, %c0_5] : memref<64x64xbf16, #tpu.memory_space<vmem>>, vector<64x64xbf16>
    %cst = arith.constant dense<0.000000e+00> : vector<16x64xf32>
    %6 = tpu.matmul %4, %5, %cst {dimension_numbers = #tpu.dot_dimension_numbers<[1], [0], [0], [1], [0, 0, 1, 1], [], []>} : vector<16x64xbf16>, vector<64x64xbf16>, vector<16x64xf32> -> vector<16x64xf32>
    %7 = arith.addf %3, %6 : vector<16x64xf32>
    %c0_6 = arith.constant 0 : index
    %c0_7 = arith.constant 0 : index
    %8 = vector.load %arg9[%c0_6, %c0_7] : memref<16x64xf32, #tpu.memory_space<vmem>>, vector<16x64xf32>
    tpu.vector_store %arg9[%c0_6, %c0_7], %7 {strides = array<i32>} : memref<16x64xf32, #tpu.memory_space<vmem>>, vector<16x64xf32>,
    %c0_i32_8 = arith.constant 0 : i32
    %9 = arith.cmpi eq, %arg1, %c0_i32_8 : i32
    %10 = arith.extui %9 : i1 to i32
    %c0_i32_9 = arith.constant 0 : i32
    %11 = arith.cmpi ne, %10, %c0_i32_9 : i32
    scf.if %11 {
      %c0_10 = arith.constant 0 : index
      %c0_11 = arith.constant 0 : index
      %12 = vector.load %arg9[%c0_10, %c0_11] : memref<16x64xf32, #tpu.memory_space<vmem>>, vector<16x64xf32>
      %c0_12 = arith.constant 0 : index
      %c0_13 = arith.constant 0 : index
      %13 = vector.load %arg4[%c0_12, %c0_13] : memref<1x64xf32, #tpu.memory_space<vmem>>, vector<1x64xf32>
      %14 = vector.broadcast %13 : vector<1x64xf32> to vector<16x64xf32>
      %15 = arith.addf %12, %14 : vector<16x64xf32>
      %c0_14 = arith.constant 0 : index
      %c0_15 = arith.constant 0 : index
      %16 = vector.load %arg5[%c0_14, %c0_15] : memref<16x64xf32, #tpu.memory_space<vmem>>, vector<16x64xf32>
      %17 = arith.addf %15, %16 : vector<16x64xf32>
      %cst_16 = arith.constant dense<0.000000e+00> : vector<16xf32>
      %18 = vector.multi_reduction <add>, %17, %cst_16 [1] : vector<16x64xf32> to vector<16xf32>
      %19 = vector.shape_cast %18 : vector<16xf32> to vector<16x1xf32>
      %cst_17 = arith.constant 6.400000e+01 : f32
      %20 = vector.broadcast %cst_17 : f32 to vector<16x1xf32>
      %21 = arith.divf %19, %20 : vector<16x1xf32>
      %22 = vector.broadcast %21 : vector<16x1xf32> to vector<16x64xf32>
      %23 = arith.subf %17, %22 : vector<16x64xf32>
      %24 = arith.mulf %23, %23 : vector<16x64xf32>
      %cst_18 = arith.constant dense<0.000000e+00> : vector<16xf32>
      %25 = vector.multi_reduction <add>, %24, %cst_18 [1] : vector<16x64xf32> to vector<16xf32>
      %26 = vector.shape_cast %25 : vector<16xf32> to vector<16x1xf32>
      %cst_19 = arith.constant 6.400000e+01 : f32
      %27 = vector.broadcast %cst_19 : f32 to vector<16x1xf32>
      %28 = arith.divf %26, %27 : vector<16x1xf32>
      %29 = vector.broadcast %21 : vector<16x1xf32> to vector<16x64xf32>
      %30 = arith.subf %17, %29 : vector<16x64xf32>
      %cst_20 = arith.constant 9.99999974E-6 : f32
      %31 = vector.broadcast %cst_20 : f32 to vector<16x1xf32>
      %32 = arith.addf %28, %31 : vector<16x1xf32>
      %33 = math.rsqrt %32 : vector<16x1xf32>
      %34 = vector.broadcast %33 : vector<16x1xf32> to vector<16x64xf32>
      %35 = arith.mulf %30, %34 : vector<16x64xf32>
      %c0_21 = arith.constant 0 : index
      %c0_22 = arith.constant 0 : index
      %36 = vector.load %arg6[%c0_21, %c0_22] : memref<1x64xf32, #tpu.memory_space<vmem>>, vector<1x64xf32>
      %37 = vector.broadcast %36 : vector<1x64xf32> to vector<16x64xf32>
      %38 = arith.mulf %35, %37 : vector<16x64xf32>
      %c0_23 = arith.constant 0 : index
      %c0_24 = arith.constant 0 : index
      %39 = vector.load %arg7[%c0_23, %c0_24] : memref<1x64xf32, #tpu.memory_space<vmem>>, vector<1x64xf32>
      %40 = vector.broadcast %39 : vector<1x64xf32> to vector<16x64xf32>
      %41 = arith.addf %38, %40 : vector<16x64xf32>
      %c0_25 = arith.constant 0 : index
      %c0_26 = arith.constant 0 : index
      %42 = vector.load %arg8[%c0_25, %c0_26] : memref<16x64xf32, #tpu.memory_space<vmem>>, vector<16x64xf32>
      tpu.vector_store %arg8[%c0_25, %c0_26], %41 {strides = array<i32>} : memref<16x64xf32, #tpu.memory_space<vmem>>, vector<16x64xf32>,
    } else {
    }
    return
  }
  func.func @transform_0(%arg0: i32, %arg1: i32) -> (i32, i32) {
    %c0_i32 = arith.constant 0 : i32
    return %arg0, %arg1 : i32, i32
  }
  func.func @transform_1(%arg0: i32, %arg1: i32) -> (i32, i32) {
    %c0_i32 = arith.constant 0 : i32
    %c0_i32_0 = arith.constant 0 : i32
    return %arg1, %c0_i32 : i32, i32
  }
  func.func @transform_2(%arg0: i32, %arg1: i32) -> (i32, i32) {
    %c0_i32 = arith.constant 0 : i32
    %c0_i32_0 = arith.constant 0 : i32
    %c0_i32_1 = arith.constant 0 : i32
    return %c0_i32, %c0_i32_0 : i32, i32
  }
  func.func @transform_3(%arg0: i32, %arg1: i32) -> (i32, i32) {
    %c0_i32 = arith.constant 0 : i32
    %c0_i32_0 = arith.constant 0 : i32
    return %arg0, %c0_i32 : i32, i32
  }
  func.func @transform_4(%arg0: i32, %arg1: i32) -> (i32, i32) {
    %c0_i32 = arith.constant 0 : i32
    %c0_i32_0 = arith.constant 0 : i32
    %c0_i32_1 = arith.constant 0 : i32
    return %c0_i32, %c0_i32_0 : i32, i32
  }
  func.func @transform_5(%arg0: i32, %arg1: i32) -> (i32, i32) {
    %c0_i32 = arith.constant 0 : i32
    %c0_i32_0 = arith.constant 0 : i32
    %c0_i32_1 = arith.constant 0 : i32
    return %c0_i32, %c0_i32_0 : i32, i32
  }
  func.func @transform_6(%arg0: i32, %arg1: i32) -> (i32, i32) {
    %c0_i32 = arith.constant 0 : i32
    %c0_i32_0 = arith.constant 0 : i32
    return %arg0, %c0_i32 : i32, i32
  }
}

module attributes {stable_mosaic.version = 11 : i64} {
  func.func @_ln_linear_kernel(%arg0: i32, %arg1: i32, %arg2: memref<16x64xf32, #tpu.memory_space<vmem>>, %arg3: memref<1x64xf32, #tpu.memory_space<vmem>>, %arg4: memref<1x64xf32, #tpu.memory_space<vmem>>, %arg5: memref<64x128xbf16, #tpu.memory_space<vmem>>, %arg6: memref<16x128xbf16, #tpu.memory_space<vmem>>) attributes {dimension_semantics = [#tpu.dimension_semantics<parallel>, #tpu.dimension_semantics<parallel>], iteration_bounds = array<i64: 1, 1>, scalar_prefetch = 0 : i64, scratch_operands = 0 : i64, tpu.core_type = #tpu.core_type<tc>, window_params = [{transform_indices = @transform_0, window_bounds = array<i64: 16, 64>}, {pipeline_mode = #tpu.pipeline_mode<synchronous>, transform_indices = @transform_1, window_bounds = array<i64: 1, 64>}, {pipeline_mode = #tpu.pipeline_mode<synchronous>, transform_indices = @transform_2, window_bounds = array<i64: 1, 64>}, {transform_indices = @transform_3, window_bounds = array<i64: 64, 128>}, {transform_indices = @transform_4, window_bounds = array<i64: 16, 128>}]} {
    %c0 = arith.constant 0 : index
    %c0_0 = arith.constant 0 : index
    %0 = vector.load %arg2[%c0, %c0_0] : memref<16x64xf32, #tpu.memory_space<vmem>>, vector<16x64xf32>
    %cst = arith.constant dense<0.000000e+00> : vector<16xf32>
    %1 = vector.multi_reduction <add>, %0, %cst [1] : vector<16x64xf32> to vector<16xf32>
    %2 = vector.shape_cast %1 : vector<16xf32> to vector<16x1xf32>
    %cst_1 = arith.constant 6.400000e+01 : f32
    %3 = vector.broadcast %cst_1 : f32 to vector<16x1xf32>
    %4 = arith.divf %2, %3 : vector<16x1xf32>
    %5 = vector.broadcast %4 : vector<16x1xf32> to vector<16x64xf32>
    %6 = arith.subf %0, %5 : vector<16x64xf32>
    %7 = arith.mulf %6, %6 : vector<16x64xf32>
    %cst_2 = arith.constant dense<0.000000e+00> : vector<16xf32>
    %8 = vector.multi_reduction <add>, %7, %cst_2 [1] : vector<16x64xf32> to vector<16xf32>
    %9 = vector.shape_cast %8 : vector<16xf32> to vector<16x1xf32>
    %cst_3 = arith.constant 6.400000e+01 : f32
    %10 = vector.broadcast %cst_3 : f32 to vector<16x1xf32>
    %11 = arith.divf %9, %10 : vector<16x1xf32>
    %12 = vector.broadcast %4 : vector<16x1xf32> to vector<16x64xf32>
    %13 = arith.subf %0, %12 : vector<16x64xf32>
    %cst_4 = arith.constant 9.99999974E-6 : f32
    %14 = vector.broadcast %cst_4 : f32 to vector<16x1xf32>
    %15 = arith.addf %11, %14 : vector<16x1xf32>
    %16 = math.rsqrt %15 : vector<16x1xf32>
    %17 = vector.broadcast %16 : vector<16x1xf32> to vector<16x64xf32>
    %18 = arith.mulf %13, %17 : vector<16x64xf32>
    %c0_5 = arith.constant 0 : index
    %c0_6 = arith.constant 0 : index
    %19 = vector.load %arg3[%c0_5, %c0_6] : memref<1x64xf32, #tpu.memory_space<vmem>>, vector<1x64xf32>
    %20 = vector.broadcast %19 : vector<1x64xf32> to vector<16x64xf32>
    %21 = arith.mulf %18, %20 : vector<16x64xf32>
    %c0_7 = arith.constant 0 : index
    %c0_8 = arith.constant 0 : index
    %22 = vector.load %arg4[%c0_7, %c0_8] : memref<1x64xf32, #tpu.memory_space<vmem>>, vector<1x64xf32>
    %23 = vector.broadcast %22 : vector<1x64xf32> to vector<16x64xf32>
    %24 = arith.addf %21, %23 : vector<16x64xf32>
    %25 = arith.truncf %24 : vector<16x64xf32> to vector<16x64xbf16>
    %c0_9 = arith.constant 0 : index
    %c0_10 = arith.constant 0 : index
    %26 = vector.load %arg5[%c0_9, %c0_10] : memref<64x128xbf16, #tpu.memory_space<vmem>>, vector<64x128xbf16>
    %cst_11 = arith.constant dense<0.000000e+00> : vector<16x128xf32>
    %27 = tpu.matmul %25, %26, %cst_11 {dimension_numbers = #tpu.dot_dimension_numbers<[1], [0], [0], [1], [0, 0, 1, 1], [], []>} : vector<16x64xbf16>, vector<64x128xbf16>, vector<16x128xf32> -> vector<16x128xf32>
    %28 = arith.negf %27 : vector<16x128xf32>
    %29 = math.exp %28 : vector<16x128xf32>
    %cst_12 = arith.constant 1.000000e+00 : f32
    %30 = vector.broadcast %cst_12 : f32 to vector<16x128xf32>
    %31 = arith.addf %30, %29 : vector<16x128xf32>
    %32 = arith.divf %30, %31 : vector<16x128xf32>
    %33 = arith.mulf %27, %32 : vector<16x128xf32>
    %34 = arith.truncf %33 : vector<16x128xf32> to vector<16x128xbf16>
    %c0_13 = arith.constant 0 : index
    %c0_14 = arith.constant 0 : index
    %35 = vector.load %arg6[%c0_13, %c0_14] : memref<16x128xbf16, #tpu.memory_space<vmem>>, vector<16x128xbf16>
    tpu.vector_store %arg6[%c0_13, %c0_14], %34 {strides = array<i32>} : memref<16x128xbf16, #tpu.memory_space<vmem>>, vector<16x128xbf16>,
    return
  }
  func.func @transform_0(%arg0: i32, %arg1: i32) -> (i32, i32) {
    %c0_i32 = arith.constant 0 : i32
    %c0_i32_0 = arith.constant 0 : i32
    return %arg0, %c0_i32 : i32, i32
  }
  func.func @transform_1(%arg0: i32, %arg1: i32) -> (i32, i32) {
    %c0_i32 = arith.constant 0 : i32
    %c0_i32_0 = arith.constant 0 : i32
    %c0_i32_1 = arith.constant 0 : i32
    return %c0_i32, %c0_i32_0 : i32, i32
  }
  func.func @transform_2(%arg0: i32, %arg1: i32) -> (i32, i32) {
    %c0_i32 = arith.constant 0 : i32
    %c0_i32_0 = arith.constant 0 : i32
    %c0_i32_1 = arith.constant 0 : i32
    return %c0_i32, %c0_i32_0 : i32, i32
  }
  func.func @transform_3(%arg0: i32, %arg1: i32) -> (i32, i32) {
    %c0_i32 = arith.constant 0 : i32
    %c0_i32_0 = arith.constant 0 : i32
    return %c0_i32, %arg1 : i32, i32
  }
  func.func @transform_4(%arg0: i32, %arg1: i32) -> (i32, i32) {
    %c0_i32 = arith.constant 0 : i32
    return %arg0, %arg1 : i32, i32
  }
}

module attributes {stable_mosaic.version = 11 : i64} {
  func.func @_matmul_kernel(%arg0: i32, %arg1: i32, %arg2: i32, %arg3: memref<16x64xbf16, #tpu.memory_space<vmem>>, %arg4: memref<64x64xbf16, #tpu.memory_space<vmem>>, %arg5: memref<16x64xf32, #tpu.memory_space<vmem>>, %arg6: memref<16x64xf32, #tpu.memory_space<vmem>>) attributes {dimension_semantics = [#tpu.dimension_semantics<parallel>, #tpu.dimension_semantics<parallel>, #tpu.dimension_semantics<arbitrary>], iteration_bounds = array<i64: 1, 1, 1>, scalar_prefetch = 0 : i64, scratch_operands = 1 : i64, tpu.core_type = #tpu.core_type<tc>, window_params = [{transform_indices = @transform_0, window_bounds = array<i64: 16, 64>}, {transform_indices = @transform_1, window_bounds = array<i64: 64, 64>}, {transform_indices = @transform_2, window_bounds = array<i64: 16, 64>}]} {
    %c0_i32 = arith.constant 0 : i32
    %0 = arith.cmpi eq, %arg2, %c0_i32 : i32
    %1 = arith.extui %0 : i1 to i32
    %c0_i32_0 = arith.constant 0 : i32
    %2 = arith.cmpi ne, %1, %c0_i32_0 : i32
    scf.if %2 {
      %cst_10 = arith.constant 0.000000e+00 : f32
      %12 = vector.broadcast %cst_10 : f32 to vector<16x64xf32>
      %c0_11 = arith.constant 0 : index
      %c0_12 = arith.constant 0 : index
      %13 = vector.load %arg6[%c0_11, %c0_12] : memref<16x64xf32, #tpu.memory_space<vmem>>, vector<16x64xf32>
      tpu.vector_store %arg6[%c0_11, %c0_12], %12 {strides = array<i32>} : memref<16x64xf32, #tpu.memory_space<vmem>>, vector<16x64xf32>,
    } else {
    }
    %c0 = arith.constant 0 : index
    %c0_1 = arith.constant 0 : index
    %3 = vector.load %arg6[%c0, %c0_1] : memref<16x64xf32, #tpu.memory_space<vmem>>, vector<16x64xf32>
    %c0_2 = arith.constant 0 : index
    %c0_3 = arith.constant 0 : index
    %4 = vector.load %arg3[%c0_2, %c0_3] : memref<16x64xbf16, #tpu.memory_space<vmem>>, vector<16x64xbf16>
    %c0_4 = arith.constant 0 : index
    %c0_5 = arith.constant 0 : index
    %5 = vector.load %arg4[%c0_4, %c0_5] : memref<64x64xbf16, #tpu.memory_space<vmem>>, vector<64x64xbf16>
    %cst = arith.constant dense<0.000000e+00> : vector<16x64xf32>
    %6 = tpu.matmul %4, %5, %cst {dimension_numbers = #tpu.dot_dimension_numbers<[1], [0], [0], [1], [0, 0, 1, 1], [], []>} : vector<16x64xbf16>, vector<64x64xbf16>, vector<16x64xf32> -> vector<16x64xf32>
    %7 = arith.addf %3, %6 : vector<16x64xf32>
    %c0_6 = arith.constant 0 : index
    %c0_7 = arith.constant 0 : index
    %8 = vector.load %arg6[%c0_6, %c0_7] : memref<16x64xf32, #tpu.memory_space<vmem>>, vector<16x64xf32>
    tpu.vector_store %arg6[%c0_6, %c0_7], %7 {strides = array<i32>} : memref<16x64xf32, #tpu.memory_space<vmem>>, vector<16x64xf32>,
    %c0_i32_8 = arith.constant 0 : i32
    %9 = arith.cmpi eq, %arg2, %c0_i32_8 : i32
    %10 = arith.extui %9 : i1 to i32
    %c0_i32_9 = arith.constant 0 : i32
    %11 = arith.cmpi ne, %10, %c0_i32_9 : i32
    scf.if %11 {
      %c0_10 = arith.constant 0 : index
      %c0_11 = arith.constant 0 : index
      %12 = vector.load %arg6[%c0_10, %c0_11] : memref<16x64xf32, #tpu.memory_space<vmem>>, vector<16x64xf32>
      %c0_12 = arith.constant 0 : index
      %c0_13 = arith.constant 0 : index
      %13 = vector.load %arg5[%c0_12, %c0_13] : memref<16x64xf32, #tpu.memory_space<vmem>>, vector<16x64xf32>
      tpu.vector_store %arg5[%c0_12, %c0_13], %12 {strides = array<i32>} : memref<16x64xf32, #tpu.memory_space<vmem>>, vector<16x64xf32>,
    } else {
    }
    return
  }
  func.func @transform_0(%arg0: i32, %arg1: i32, %arg2: i32) -> (i32, i32) {
    %c0_i32 = arith.constant 0 : i32
    return %arg0, %arg2 : i32, i32
  }
  func.func @transform_1(%arg0: i32, %arg1: i32, %arg2: i32) -> (i32, i32) {
    %c0_i32 = arith.constant 0 : i32
    return %arg2, %arg1 : i32, i32
  }
  func.func @transform_2(%arg0: i32, %arg1: i32, %arg2: i32) -> (i32, i32) {
    %c0_i32 = arith.constant 0 : i32
    return %arg0, %arg1 : i32, i32
  }
}

module attributes {stable_mosaic.version = 11 : i64} {
  func.func @_rope_pair_kernel(%arg0: i32, %arg1: memref<1x8x64xf32, #tpu.memory_space<vmem>>, %arg2: memref<1x8x64xf32, #tpu.memory_space<vmem>>, %arg3: memref<8x64xf32, #tpu.memory_space<vmem>>, %arg4: memref<8x64xf32, #tpu.memory_space<vmem>>, %arg5: memref<8x64xf32, #tpu.memory_space<vmem>>, %arg6: memref<1x8x64xf32, #tpu.memory_space<vmem>>, %arg7: memref<1x8x64xf32, #tpu.memory_space<vmem>>) attributes {dimension_semantics = [#tpu.dimension_semantics<parallel>], iteration_bounds = array<i64: 2>, scalar_prefetch = 0 : i64, scratch_operands = 0 : i64, tpu.core_type = #tpu.core_type<tc>, window_params = [{transform_indices = @transform_0, window_bounds = array<i64: 1, 8, 64>}, {transform_indices = @transform_1, window_bounds = array<i64: 1, 8, 64>}, {pipeline_mode = #tpu.pipeline_mode<synchronous>, transform_indices = @transform_2, window_bounds = array<i64: 8, 64>}, {pipeline_mode = #tpu.pipeline_mode<synchronous>, transform_indices = @transform_3, window_bounds = array<i64: 8, 64>}, {pipeline_mode = #tpu.pipeline_mode<synchronous>, transform_indices = @transform_4, window_bounds = array<i64: 8, 64>}, {transform_indices = @transform_5, window_bounds = array<i64: 1, 8, 64>}, {transform_indices = @transform_6, window_bounds = array<i64: 1, 8, 64>}]} {
    %c0 = arith.constant 0 : index
    %c0_0 = arith.constant 0 : index
    %0 = vector.load %arg3[%c0, %c0_0] : memref<8x64xf32, #tpu.memory_space<vmem>>, vector<8x64xf32>
    %c0_1 = arith.constant 0 : index
    %c0_2 = arith.constant 0 : index
    %1 = vector.load %arg4[%c0_1, %c0_2] : memref<8x64xf32, #tpu.memory_space<vmem>>, vector<8x64xf32>
    %c0_3 = arith.constant 0 : index
    %c0_4 = arith.constant 0 : index
    %2 = vector.load %arg5[%c0_3, %c0_4] : memref<8x64xf32, #tpu.memory_space<vmem>>, vector<8x64xf32>
    %c0_5 = arith.constant 0 : index
    %c0_6 = arith.constant 0 : index
    %c0_7 = arith.constant 0 : index
    %3 = vector.load %arg1[%c0_5, %c0_6, %c0_7] : memref<1x8x64xf32, #tpu.memory_space<vmem>>, vector<1x8x64xf32>
    %4 = vector.shape_cast %3 : vector<1x8x64xf32> to vector<8x64xf32>
    %5 = vector.extract_strided_slice %4 {offsets = [0, 8], sizes = [8, 56], strides = [1, 1]} : vector<8x64xf32> to vector<8x56xf32>
    %6 = vector.extract_strided_slice %4 {offsets = [0, 0], sizes = [8, 8], strides = [1, 1]} : vector<8x64xf32> to vector<8x8xf32>
    %7 = tpu.concatenate %5, %6 in 1 : vector<8x56xf32>, vector<8x8xf32> -> vector<8x64xf32>
    %8 = vector.extract_strided_slice %4 {offsets = [0, 56], sizes = [8, 8], strides = [1, 1]} : vector<8x64xf32> to vector<8x8xf32>
    %9 = vector.extract_strided_slice %4 {offsets = [0, 0], sizes = [8, 56], strides = [1, 1]} : vector<8x64xf32> to vector<8x56xf32>
    %10 = tpu.concatenate %8, %9 in 1 : vector<8x8xf32>, vector<8x56xf32> -> vector<8x64xf32>
    %11 = arith.mulf %4, %0 : vector<8x64xf32>
    %12 = arith.mulf %7, %1 : vector<8x64xf32>
    %13 = arith.addf %11, %12 : vector<8x64xf32>
    %14 = arith.mulf %10, %2 : vector<8x64xf32>
    %15 = arith.addf %13, %14 : vector<8x64xf32>
    %c0_8 = arith.constant 0 : index
    %c0_9 = arith.constant 0 : index
    %c0_10 = arith.constant 0 : index
    %16 = vector.load %arg6[%c0_8, %c0_9, %c0_10] : memref<1x8x64xf32, #tpu.memory_space<vmem>>, vector<1x8x64xf32>
    %17 = vector.shape_cast %16 : vector<1x8x64xf32> to vector<8x64xf32>
    %18 = vector.shape_cast %15 : vector<8x64xf32> to vector<1x8x64xf32>
    tpu.vector_store %arg6[%c0_8, %c0_9, %c0_10], %18 {strides = array<i32>} : memref<1x8x64xf32, #tpu.memory_space<vmem>>, vector<1x8x64xf32>,
    %c0_11 = arith.constant 0 : index
    %c0_12 = arith.constant 0 : index
    %c0_13 = arith.constant 0 : index
    %19 = vector.load %arg2[%c0_11, %c0_12, %c0_13] : memref<1x8x64xf32, #tpu.memory_space<vmem>>, vector<1x8x64xf32>
    %20 = vector.shape_cast %19 : vector<1x8x64xf32> to vector<8x64xf32>
    %21 = vector.extract_strided_slice %20 {offsets = [0, 8], sizes = [8, 56], strides = [1, 1]} : vector<8x64xf32> to vector<8x56xf32>
    %22 = vector.extract_strided_slice %20 {offsets = [0, 0], sizes = [8, 8], strides = [1, 1]} : vector<8x64xf32> to vector<8x8xf32>
    %23 = tpu.concatenate %21, %22 in 1 : vector<8x56xf32>, vector<8x8xf32> -> vector<8x64xf32>
    %24 = vector.extract_strided_slice %20 {offsets = [0, 56], sizes = [8, 8], strides = [1, 1]} : vector<8x64xf32> to vector<8x8xf32>
    %25 = vector.extract_strided_slice %20 {offsets = [0, 0], sizes = [8, 56], strides = [1, 1]} : vector<8x64xf32> to vector<8x56xf32>
    %26 = tpu.concatenate %24, %25 in 1 : vector<8x8xf32>, vector<8x56xf32> -> vector<8x64xf32>
    %27 = arith.mulf %20, %0 : vector<8x64xf32>
    %28 = arith.mulf %23, %1 : vector<8x64xf32>
    %29 = arith.addf %27, %28 : vector<8x64xf32>
    %30 = arith.mulf %26, %2 : vector<8x64xf32>
    %31 = arith.addf %29, %30 : vector<8x64xf32>
    %c0_14 = arith.constant 0 : index
    %c0_15 = arith.constant 0 : index
    %c0_16 = arith.constant 0 : index
    %32 = vector.load %arg7[%c0_14, %c0_15, %c0_16] : memref<1x8x64xf32, #tpu.memory_space<vmem>>, vector<1x8x64xf32>
    %33 = vector.shape_cast %32 : vector<1x8x64xf32> to vector<8x64xf32>
    %34 = vector.shape_cast %31 : vector<8x64xf32> to vector<1x8x64xf32>
    tpu.vector_store %arg7[%c0_14, %c0_15, %c0_16], %34 {strides = array<i32>} : memref<1x8x64xf32, #tpu.memory_space<vmem>>, vector<1x8x64xf32>,
    return
  }
  func.func @transform_0(%arg0: i32) -> (i32, i32, i32) {
    %c0_i32 = arith.constant 0 : i32
    %c0_i32_0 = arith.constant 0 : i32
    %c0_i32_1 = arith.constant 0 : i32
    return %arg0, %c0_i32, %c0_i32_0 : i32, i32, i32
  }
  func.func @transform_1(%arg0: i32) -> (i32, i32, i32) {
    %c0_i32 = arith.constant 0 : i32
    %c0_i32_0 = arith.constant 0 : i32
    %c0_i32_1 = arith.constant 0 : i32
    return %arg0, %c0_i32, %c0_i32_0 : i32, i32, i32
  }
  func.func @transform_2(%arg0: i32) -> (i32, i32) {
    %c0_i32 = arith.constant 0 : i32
    %c0_i32_0 = arith.constant 0 : i32
    %c0_i32_1 = arith.constant 0 : i32
    return %c0_i32, %c0_i32_0 : i32, i32
  }
  func.func @transform_3(%arg0: i32) -> (i32, i32) {
    %c0_i32 = arith.constant 0 : i32
    %c0_i32_0 = arith.constant 0 : i32
    %c0_i32_1 = arith.constant 0 : i32
    return %c0_i32, %c0_i32_0 : i32, i32
  }
  func.func @transform_4(%arg0: i32) -> (i32, i32) {
    %c0_i32 = arith.constant 0 : i32
    %c0_i32_0 = arith.constant 0 : i32
    %c0_i32_1 = arith.constant 0 : i32
    return %c0_i32, %c0_i32_0 : i32, i32
  }
  func.func @transform_5(%arg0: i32) -> (i32, i32, i32) {
    %c0_i32 = arith.constant 0 : i32
    %c0_i32_0 = arith.constant 0 : i32
    %c0_i32_1 = arith.constant 0 : i32
    return %arg0, %c0_i32, %c0_i32_0 : i32, i32, i32
  }
  func.func @transform_6(%arg0: i32) -> (i32, i32, i32) {
    %c0_i32 = arith.constant 0 : i32
    %c0_i32_0 = arith.constant 0 : i32
    %c0_i32_1 = arith.constant 0 : i32
    return %arg0, %c0_i32, %c0_i32_0 : i32, i32, i32
  }
}

</mosaic_0001>

<bundles_post_ra>
// kernel: token_importance_predictor_forward.9
= control target key start
LH: loop header
LB: loop body
LE: loop exit
PB: predicated region body
PF: predicated region fallthrough
CT: control target
= control target key end

     0   :  { %vm16_vm0 = vcmask 261120   ;;  %v158_v0 = vmov 0.0   ;;  %vm159_vm1 = vmmov 0   ;;  %vm56_vm2 = vcmask 523264   ;;  %s203_s1 = inlined_call_operand.vmem [shape: bf16[64,32], index: 1, kind: input, shape index: {}]   ;;  %s204_s0 = inlined_call_operand.vmem [shape: f32[16,64], index: 0, kind: input, shape index: {}]   ;;  %s205_s2 = inlined_call_operand.vmem [shape: bf16[16,32], index: 2, kind: output, shape index: {}]  }
   0x1   :  { %140 = vmatprep.subr.bf16.mxu0 %v158_v0  ;;  %v154_v1 = vld [vmem:[%s203_s1] sm:$0xff]   ;;  %148 = vmatprep.mubr.msk.bf16.mxu0 %vm159_vm1, %v158_v0  ;;  %17 = vst.msk [vmem:[#allocation2] sm:$0xff] %vm16_vm0, %v158_v0  ;;  %18 = vst.msk [vmem:[#allocation2 + $0x8] sm:$0xff] %vm16_vm0, %v158_v0  ;;  %v155_v2 = vld [vmem:[%s203_s1 + $0x8] sm:$0xff]   ;;  %vm119_vm3 = vcmask 257024  }
   0x2   :  { %141 = vmatpush3.bf16.msra.mxu0 %v154_v1  ;;  %v156_v3 = vld [vmem:[%s203_s1 + $0x10] sm:$0xff]   ;;  %v157_v4 = vld [vmem:[%s203_s1 + $0x18] sm:$0xff]   ;;  %v21_v5 = vld [vmem:[%s204_s0] sm:$0xff] }
   0x3   :  { %142 = vmatprep.subr.bf16.mxu0 %v158_v0  ;;  %v22_v6 = vld [vmem:[%s204_s0 + $0x8] sm:$0xff] }
   0x4   :  { %v23_v7 = vpack.c.bf16 %v22_v6, %v21_v5 }
   0x6   :  { %143 = vmatpush3.bf16.msra.mxu0 %v155_v2 }
   0x7   :  { %144 = vmatprep.subr.bf16.mxu0 %v158_v0 }
   0x8   :  { %v19_v8 = vld [vmem:[#allocation2] sm:$0xff]  ;;  %v20_v10 = vld [vmem:[#allocation2 + $0x8] sm:$0xff] }
   0xa   :  { %145 = vmatpush3.bf16.msra.mxu0 %v156_v3 }
   0xb   :  { %146 = vmatprep.subr.bf16.mxu0 %v158_v0 }
   0xe   :  { %147 = vmatpush3.bf16.msra.mxu0 %v157_v4 }
  0x11   :  { %149 = vmatmul.mubr.msk.bf16.vlgmr.msra.gmra.mrb[0].mxu0 %vm56_vm2, %v23_v7 }
  0xe4   :  { %v94_v9 = vpop.f32.mrb[0].mxu0 }
  0xe5   :  { %v101_v11 = vadd.f32 %v94_v9, %v19_v8  ;;  %v150_v12 = vpop.f32.mrb[1].mxu0 }
  0xe6   :  { %v97_v13 = vpop.f32.mrb[2].mxu0 }
  0xe7   :  { %104 = vst.msk [vmem:[#allocation2] sm:$0xff] %vm16_vm0, %v101_v11  ;;  %v102_v14 = vadd.f32 %v97_v13, %v20_v10  ;;  %v151_v15 = vpop.f32.mrb[3].mxu0 }
  0xe9   :  { %105 = vst.msk [vmem:[#allocation2 + $0x8] sm:$0xff] %vm16_vm0, %v102_v14 }
  0xee   :  { %v109_v16 = vld [vmem:[#allocation2] sm:$0xff] }
  0xef   :  { %v133_v17 = vpack.c.bf16 %v109_v16, %v109_v16 }
  0xf0   :  { %v110_v18 = vld [vmem:[#allocation2 + $0x8] sm:$0xff] }
  0xf1   :  { %120 = vst.msk [vmem:[%s205_s2] sm:$0xf] %vm119_vm3, %v133_v17  ;;  %v134_v19 = vpack.c.bf16 %v110_v18, %v110_v18 }
  0xf3   :  { %121 = vst.msk [vmem:[%s205_s2 + $0x4] sm:$0xf] %vm119_vm3, %v134_v19 }

// kernel: token_importance_predictor_forward.10
= control target key start
LH: loop header
LB: loop body
LE: loop exit
PB: predicated region body
PF: predicated region fallthrough
CT: control target
= control target key end

     0   :  { %vm16_vm0 = vcmask 785408   ;;  %v125_v0 = vmov 0.0   ;;  %vm126_vm1 = vmmov 0   ;;  %vm44_vm2 = vcmask 261120   ;;  %s163_s1 = inlined_call_operand.vmem [shape: bf16[32,96], index: 1, kind: input, shape index: {}]   ;;  %s164_s0 = inlined_call_operand.vmem [shape: bf16[16,32], index: 0, kind: input, shape index: {}]   ;;  %s165_s2 = inlined_call_operand.vmem [shape: f32[16,96], index: 2, kind: output, shape index: {}]  }
   0x1   :  { %112 = vmatprep.subr.bf16.mxu0 %v125_v0  ;;  %v122_v1 = vld [vmem:[%s163_s1] sm:$0xff]   ;;  %116 = vmatprep.mubr.msk.bf16.mxu0 %vm126_vm1, %v125_v0  ;;  %17 = vst.msk [vmem:[#allocation2] sm:$0xff] %vm16_vm0, %v125_v0  ;;  %18 = vst.msk [vmem:[#allocation2 + $0x8] sm:$0xff] %vm16_vm0, %v125_v0  ;;  %v123_v2 = vld [vmem:[%s163_s1 + $0x8] sm:$0xff]  }
   0x2   :  { %113 = vmatpush3.bf16.msra.mxu0 %v122_v1  ;;  %v124_v3 = vld [vmem:[%s164_s0] sm:$0xff]  }
   0x3   :  { %114 = vmatprep.subr.bf16.mxu0 %v125_v0 }
   0x6   :  { %115 = vmatpush3.bf16.msra.mxu0 %v123_v2 }
   0x8   :  { %v19_v4 = vld [vmem:[#allocation2] sm:$0xff]  ;;  %v20_v6 = vld [vmem:[#allocation2 + $0x8] sm:$0xff] }
   0x9   :  { %117 = vmatmul.mubr.msk.bf16.vlgmr.msra.gmra.mrb[0].mxu0 %vm44_vm2, %v124_v3 }
  0xdc   :  { %v82_v5 = vpop.f32.mrb[0].mxu0 }
  0xdd   :  { %v89_v7 = vadd.f32 %v82_v5, %v19_v4  ;;  %v118_v8 = vpop.f32.mrb[1].mxu0 }
  0xde   :  { %v85_v9 = vpop.f32.mrb[2].mxu0 }
  0xdf   :  { %92 = vst.msk [vmem:[#allocation2] sm:$0xff] %vm16_vm0, %v89_v7  ;;  %v90_v10 = vadd.f32 %v85_v9, %v20_v6  ;;  %v119_v11 = vpop.f32.mrb[3].mxu0 }
  0xe1   :  { %93 = vst.msk [vmem:[#allocation2 + $0x8] sm:$0xff] %vm16_vm0, %v90_v10 }
  0xe6   :  { %v97_v12 = vld [vmem:[#allocation2] sm:$0xff] }
  0xe7   :  { %99 = vst.msk [vmem:[%s165_s2] sm:$0xff] %vm16_vm0, %v97_v12 }
  0xe8   :  { %v98_v13 = vld [vmem:[#allocation2 + $0x8] sm:$0xff] }
  0xe9   :  { %100 = vst.msk [vmem:[%s165_s2 + $0x8] sm:$0xff] %vm16_vm0, %v98_v13 }

// kernel: token_importance_predictor_forward.12
= control target key start
LH: loop header
LB: loop body
LE: loop exit
PB: predicated region body
PF: predicated region fallthrough
CT: control target
= control target key end

     0   :  { %vm23_vm0 = vcmask 261120   ;;  %v195_v15 = vmov 0.0   ;;  %vm196_vm1 = vmmov 0   ;;  %vm155_vm2 = vcmask 519168   ;;  %s259_s0 = inlined_call_operand.vmem [shape: f32[16,32], index: 0, kind: input, shape index: {}]   ;;  %s260_s3 = inlined_call_operand.vmem [shape: bf16[32,64], index: 3, kind: input, shape index: {}]   ;;  %s261_s1 = inlined_call_operand.vmem [shape: f32[1,32], index: 1, kind: input, shape index: {}]   ;;  %s262_s2 = inlined_call_operand.vmem [shape: f32[1,32], index: 2, kind: input, shape index: {}]   ;;  %s263_s4 = inlined_call_operand.vmem [shape: f32[1,64], index: 4, kind: input, shape index: {}]   ;;  %s264_s5 = inlined_call_operand.vmem [shape: bf16[16,64], index: 5, kind: output, shape index: {}]  }
   0x1   :  { %v21_v0 = vld [vmem:[%s259_s0] sm:$0xff]  ;;  %v22_v1 = vld [vmem:[%s259_s0 + $0x8] sm:$0xff]  ;;  %175 = vmatprep.subr.bf16.mxu0 %v195_v15  ;;  %179 = vmatprep.mubr.msk.bf16.mxu0 %vm196_vm1, %v195_v15 }
   0x2   :  { %v24_v2 = vsel %vm23_vm0, %v21_v0, 0.0  ;;  %v27_v3 = vsel %vm23_vm0, %v22_v1, 0.0  ;;  %v185_v14 = vld [vmem:[%s260_s3] sm:$0xff]   ;;  %v186_v16 = vld [vmem:[%s260_s3 + $0x8] sm:$0xff]  }
   0x3   :  { %25 = vadd.xlane.f32.xlu0 %v24_v2  ;;  %176 = vmatpush3.bf16.msra.mxu0 %v185_v14  ;;  %v162_v25 = vld [vmem:[%s261_s1] ss:$0 sm:$0xff] }
   0x4   :  { %177 = vmatprep.subr.bf16.mxu0 %v195_v15  ;;  %v163_v29 = vld [vmem:[%s262_s2] ss:$0 sm:$0xff] }
   0x5   :  { %v164_v34 = vld [vmem:[%s263_s4] ss:$0 sm:$0xff] }
   0x7   :  { %28 = vadd.xlane.f32.xlu0 %v27_v3  ;;  %178 = vmatpush3.bf16.msra.mxu0 %v186_v16 }
  0x90   :  { %v26_v4 = vpop.xlane.xlu0 %25 }
  0x91   :  { %v31_v5 = vmul.f32 0.03125, %v26_v4 }
  0x93   :  { %v33_v6 = vsub.f32 %v21_v0, %v31_v5 }
  0x94   :  { %v29_v7 = vpop.xlane.xlu0 %28 }
  0x95   :  { %v32_v8 = vmul.f32 0.03125, %v29_v7  ;;  %v35_v9 = vmul.f32 %v33_v6, %v33_v6 }
  0x97   :  { %v34_v10 = vsub.f32 %v22_v1, %v32_v8  ;;  %v37_v11 = vsel %vm23_vm0, %v35_v9, 0.0 }
  0x98   :  { %38 = vadd.xlane.f32.xlu1 %v37_v11 }
  0x99   :  { %v36_v12 = vmul.f32 %v34_v10, %v34_v10 }
  0x9b   :  { %v40_v13 = vsel %vm23_vm0, %v36_v12, 0.0 }
  0x9c   :  { %41 = vadd.xlane.f32.xlu1 %v40_v13 }
 0x125   :  { %v39_v17 = vpop.xlane.xlu1 %38 }
 0x126   :  { %v43_v18 = vmul.f32 0.03125, %v39_v17 }
 0x128   :  { %v45_v19 = vadd.f32 1e-05, %v43_v18 }
 0x129   :  { %v42_v20 = vpop.xlane.xlu1 %41 }
 0x12a   :  { %187 = vrsqrt.f32 %v45_v19  ;;  %v44_v21 = vmul.f32 0.03125, %v42_v20 }
 0x12c   :  { %v46_v22 = vadd.f32 1e-05, %v44_v21 }
 0x12e   :  { %189 = vrsqrt.f32 %v46_v22 }
 0x134   :  { %v188_v23 = vpop.eup %187 }
 0x135   :  { %v49_v24 = vmul.f32 %v188_v23, %v33_v6 }
 0x137   :  { %v58_v28 = vmul.f32 %v162_v25, %v49_v24 }
 0x138   :  { %v190_v26 = vpop.eup %189 }
 0x139   :  { %v50_v27 = vmul.f32 %v190_v26, %v34_v10  ;;  %v67_v31 = vadd.f32 %v163_v29, %v58_v28 }
 0x13b   :  { %v59_v30 = vmul.f32 %v162_v25, %v50_v27 }
 0x13d   :  { %v68_v32 = vadd.f32 %v163_v29, %v59_v30 }
 0x13f   :  { %v69_v33 = vpack.c.bf16 %v68_v32, %v67_v31 }
 0x141   :  { %180 = vmatmul.mubr.msk.bf16.vlgmr.msra.gmra.mrb[0].mxu0 %vm23_vm0, %v69_v33 }
 0x214   :  { %v130_v35 = vpop.f32.mrb[0].mxu0 }
 0x215   :  { %v131_v36 = vadd.f32 %v164_v34, %v130_v35  ;;  %v181_v37 = vpop.f32.mrb[1].mxu0 }
 0x216   :  { %v133_v38 = vpop.f32.mrb[2].mxu0 }
 0x217   :  { %v139_v39 = vmul.f32 0.70710677, %v131_v36  ;;  %v134_v40 = vadd.f32 %v164_v34, %v133_v38  ;;  %v182_v41 = vpop.f32.mrb[3].mxu0  ;;  %v137_v44 = vmul.f32 0.5, %v131_v36 }
 0x219   :  { %191 = verf.f32 %v139_v39  ;;  %v140_v42 = vmul.f32 0.70710677, %v134_v40  ;;  %v138_v48 = vmul.f32 0.5, %v134_v40 }
 0x21b   :  { %193 = verf.f32 %v140_v42 }
 0x223   :  { %v192_v43 = vpop.eup %191 }
 0x224   :  { %v143_v45 = vadd.f32 1.0, %v192_v43 }
 0x225   :  { %v194_v46 = vpop.eup %193 }
 0x226   :  { %v145_v47 = vmul.f32 %v143_v45, %v137_v44  ;;  %v144_v49 = vadd.f32 1.0, %v194_v46 }
 0x228   :  { %v170_v50 = vpack.c.bf16 %v145_v47, %v145_v47  ;;  %v146_v51 = vmul.f32 %v144_v49, %v138_v48 }
 0x22a   :  { %156 = vst.msk [vmem:[%s264_s5] sm:$0xf] %vm155_vm2, %v170_v50  ;;  %v171_v52 = vpack.c.bf16 %v146_v51, %v146_v51 }
 0x22c   :  { %157 = vst.msk [vmem:[%s264_s5 + $0x4] sm:$0xf] %vm155_vm2, %v171_v52 }

// kernel: token_importance_predictor_forward.11
= control target key start
LH: loop header
LB: loop body
LE: loop exit
PB: predicated region body
PF: predicated region fallthrough
CT: control target
= control target key end

     0   :  { %s673_s15 = smov 0   ;;  %s738_s0 = inlined_call_operand.vmem [shape: f32[2,8,96], index: 0, kind: input, shape index: {}]   ;;  %s739_s1 = inlined_call_operand.vmem [shape: f32[8,32], index: 1, kind: input, shape index: {}]   ;;  %s740_s2 = inlined_call_operand.vmem [shape: f32[8,32], index: 2, kind: input, shape index: {}]   ;;  %s741_s3 = inlined_call_operand.vmem [shape: f32[8,32], index: 3, kind: input, shape index: {}]   ;;  %s742_s4 = inlined_call_operand.vmem [shape: f32[2,8,32], index: 4, kind: output, shape index: {}]  }
   0x1 LB: > { %s553_s16 = sadd.s32 4294967295, %s633_s15   ;;  %p557_p0 = scmp.ge.s32.totalorder %s633_s15, 1  ;;  %s633_s15 = sphi %s673_s15, %s14_s15  }
   0x2   : > { %p161_p1 = scmp.lt.s32.totalorder %s633_s15, 3 }
   0x4   : > { %p162_p2 = pnand %p557_p0, %p161_p1 }
   0x5   : > { %p185_p3 = scmp.lt.s32.totalorder (!%p162_p2), %s553_s16, 1  ;;  %s635_s21 = smov (!%p162_p2), 104   ;;  %v195_v1 = vld [vmem:[%s739_s1] sm:$0xff] (!%p162_p2)  ;;  %vm213_vm0 = vcmask (!%p162_p2), 64512   ;;  %vm205_vm1 = vcmask (!%p162_p2), 195584   ;;  %v643_v18 = vmov (!%p162_p2), 0.0   ;;  %v361_v38 = vlaneseq (!%p162_p2) }
   0x6   : > { %165 = sbr.rel (%p162_p2) target bundleno = 1359 (0x54f), region = 36  ;;  %s636_s22 = smov (!%p162_p2), 120   ;;  %v197_v4 = vld [vmem:[%s741_s3] sm:$0xff] (!%p162_p2)  ;;  %580 = vmatprep.subr.bf16.mxu1 (!%p162_p2), %v643_v18  ;;  %574 = vmatprep.subr.bf16.mxu0 (!%p162_p2), %v643_v18  ;;  %vm644_vm2 = vmmov (!%p162_p2), 0   ;;  %vm263_vm3 = vcmask (!%p162_p2), 130048   ;;  %vm400_vm5 = vcmask (!%p162_p2), 1043456  }
   0x7   : > { %s637_s23 = smov (!%p162_p2), 72   ;;  %s638_s24 = smov (!%p162_p2), 88   ;;  %v196_v5 = vld [vmem:[%s740_s2] sm:$0xff] (!%p162_p2)  ;;  %582 = vmatprep.mubr.msk.bf16.mxu1 (!%p162_p2), %vm644_vm2, %v643_v18  ;;  %576 = vmatprep.mubr.msk.bf16.mxu0 (!%p162_p2), %vm644_vm2, %v643_v18  ;;  %v362_v39 = vshrl.u32 (!%p162_p2), %v361_v38, 7  ;;  %v364_v40 = vand.u32 (!%p162_p2), 127, %v361_v38  ;;  %vm498_vm6 = vcmask (!%p162_p2), 261120  }
   0x8   : > { %s639_s27 = smov (!%p162_p2), 32   ;;  %s640_s6 = smov (!%p162_p2), 24  }
   0x9   : > { %s641_s7 = smov (!%p162_p2), 112   ;;  %s642_s8 = smov (!%p162_p2), 8   ;;  %vm365_vm4 = vcmp.le.s32.totalorder (!%p162_p2), %v364_v40, %v362_v39 }
   0xa   : > { %s645_s9 = smov (!%p162_p2), 96   ;;  %s646_s10 = smov (!%p162_p2), 64  }
   0xb   : > { %s647_s11 = smov (!%p162_p2), 16  }
   0xd   : > { %s744_s16 = smov (!%p185_p3, %s553_s16), 1 }
   0xe   : > { %s558_s17 = sshll.u32 %s744_s16, 3 }
   0xf   : > { %s188_s20 = scalar_lea.vmem %s738_s0, %s558_s17  ;;  %s192_s14 = scalar_lea.vmem %s742_s4, %s558_s17 }
  0x10   : > { %v689_v0 = vld [vmem:[%s188_s20] sm:$0xff] }
  0x11   : > { %207 = vrot.lane.b32.xlu1 %v689_v0, %s635_s21  ;;  %199 = vrot.lane.b32.xlu0 %v689_v0, %s636_s22  ;;  %v215_v23 = vmul.f32 %v195_v1, %v689_v0 }
  0x15   : > { %224 = vrot.lane.b32.xlu1 %v689_v0, %s637_s23  ;;  %220 = vrot.lane.b32.xlu0 %v689_v0, %s638_s24 }
  0x19   : > { %229 = vrot.lane.b32.xlu0 %v195_v1, %s639_s27 }
  0x83   : > { %v208_v2 = vpop.permute.xlu1 %207  ;;  %v200_v3 = vpop.permute.xlu0 %199 }
  0x87   : > { %v225_v6 = vpop.permute.xlu1 %224  ;;  %v221_v7 = vpop.permute.xlu0 %220 }
  0x88   : > { %v227_v8 = vsel %vm213_vm0, %v225_v6, %v208_v2  ;;  %v223_v9 = vsel %vm205_vm1, %v221_v7, %v200_v3 }
  0x89   : > { %v239_v10 = vmul.f32 %v227_v8, %v197_v4  ;;  %v233_v11 = vmul.f32 %v223_v9, %v196_v5 }
  0x8b   : > { %241 = vrot.lane.b32.xlu0 %v239_v10, %s639_s27  ;;  %235 = vrot.lane.b32.xlu1 %v233_v11, %s639_s27  ;;  %v230_v12 = vpop.permute.xlu0 %229 }
  0x8c   : > { %v232_v13 = vmul.f32 %v230_v12, %v689_v0 }
  0x8f   : > { %202 = vrot.lane.b32.xlu0 %v689_v0, %s640_s6 }
  0xfd   : > { %v236_v14 = vpop.permute.xlu1 %235  ;;  %v242_v16 = vpop.permute.xlu0 %241 }
  0xfe   : > { %v238_v15 = vadd.f32 %v236_v14, %v232_v13 }
 0x100   : > { %v244_v17 = vadd.f32 %v242_v16, %v238_v15 }
 0x101   : > { %v203_v19 = vpop.permute.xlu0 %202 }
 0x102   : > { %250 = vrot.lane.b32.xlu1 %v244_v17, %s641_s7  ;;  %v206_v20 = vsel %vm205_vm1, %v200_v3, %v203_v19  ;;  %v258_v26 = vpack.c.bf16 %v244_v17, %v244_v17 }
 0x103   : > { %v216_v24 = vmul.f32 %v206_v20, %v196_v5 }
 0x105   : > { %v217_v28 = vadd.f32 %v216_v24, %v215_v23 }
 0x106   : > { %210 = vrot.lane.b32.xlu1 %v689_v0, %s642_s8 }
 0x174   : > { %v251_v21 = vpop.permute.xlu1 %250 }
 0x175   : > { %v259_v22 = vpack.c.bf16 %v251_v21, %v251_v21 }
 0x177   : > { %311 = vrot.lane.b32.xlu0 %v259_v22, %s645_s9 }
 0x178   : > { %v211_v25 = vpop.permute.xlu1 %210 }
 0x179   : > { %v214_v27 = vsel %vm213_vm0, %v208_v2, %v211_v25 }
 0x17a   : > { %v218_v29 = vmul.f32 %v214_v27, %v197_v4  ;;  %v392_v4 = vpack.c.bf16 %v689_v0, %v689_v0 }
 0x17b   : > { %261 = vrot.lane.b32.xlu0 %v258_v26, %s645_s9 }
 0x17c   : > { %v219_v30 = vadd.f32 %v218_v29, %v217_v28 }
 0x17e   : > { %246 = vrot.lane.b32.xlu1 %v219_v30, %s641_s7  ;;  %v256_v37 = vpack.c.bf16 %v219_v30, %v219_v30 }
 0x17f   : > { %253 = vrot.lane.b32.xlu0 %v689_v0, %s641_s7 }
 0x1e9   : > { %v312_v31 = vpop.permute.xlu0 %311 }
 0x1ea   : > { %v317_v32 = vsel %vm263_vm3, %v312_v31, 0 }
 0x1eb   : > { %581 = vmatpush3.bf16.xpose.msra.mxu1 %v317_v32 }
 0x1ec   : > { %592 = vmatprep.subr.bf16.mxu1 %v643_v18 }
 0x1ed   : > { %v262_v33 = vpop.permute.xlu0 %261 }
 0x1ee   : > { %v268_v34 = vsel %vm263_vm3, %v262_v33, 0 }
 0x1ef   : > { %575 = vmatpush3.bf16.xpose.msra.mxu0 %v268_v34 }
 0x1f0   : > { %v247_v35 = vpop.permute.xlu1 %246  ;;  %586 = vmatprep.subr.bf16.mxu0 %v643_v18 }
 0x1f1   : > { %v257_v36 = vpack.c.bf16 %v247_v35, %v247_v35  ;;  %v254_v55 = vpop.permute.xlu0 %253 }
 0x1f2   : > { %v393_v56 = vpack.c.bf16 %v254_v55, %v254_v55 }
 0x1f3   : > { %583 = vmatmul.mubr.msk.bf16.vlgmr.msra.gmra.mrb[0].mxu1 %vm263_vm3, %v257_v36 }
 0x1f4   : > { %594 = vmatprep.mubr.msk.bf16.mxu1 %vm644_vm2, %v643_v18 }
 0x1f6   : > { %577 = vmatmul.mubr.msk.bf16.vlgmr.msra.gmra.mrb[0].mxu0 %vm263_vm3, %v256_v37 }
 0x1f7   : > { %588 = vmatprep.mubr.msk.bf16.mxu0 %vm644_vm2, %v643_v18 }
 0x2c6   : > { %v353_v41 = vpop.f32.mrb[0].mxu1 }
 0x2c7   : > { %v360_v42 = vmul.f32 0.25, %v353_v41  ;;  %v584_v43 = vpop.f32.mrb[1].mxu1 }
 0x2c8   : > { %v356_v44 = vpop.f32.mrb[2].mxu1 }
 0x2c9   : > { %v304_v45 = vpop.f32.mrb[0].mxu0  ;;  %v585_v46 = vpop.f32.mrb[3].mxu1  ;;  %v367_v47 = vsel %vm365_vm4, %v360_v42, -1e+30 }
 0x2ca   : > { %v359_v48 = vmul.f32 0.25, %v304_v45  ;;  %v578_v49 = vpop.f32.mrb[1].mxu0  ;;  %v371_v50 = vsel %vm213_vm0, %v367_v47, -inf }
 0x2cb   : > { %372 = vmax.xlane.f32.xlu1 %v371_v50  ;;  %v307_v51 = vpop.f32.mrb[2].mxu0 }
 0x2cc   : > { %v579_v52 = vpop.f32.mrb[3].mxu0  ;;  %v366_v53 = vsel %vm365_vm4, %v359_v48, -1e+30 }
 0x2cd   : > { %v368_v54 = vsel %vm213_vm0, %v366_v53, -inf }
 0x2ce   : > { %369 = vmax.xlane.f32.xlu0 %v368_v54 }
 0x2e4   : > { %445 = vrot.lane.b32.xlu0 %v393_v56, %s646_s10 }
 0x358   : > { %v373_v57 = vpop.xlane.xlu1 %372 }
 0x359   : > { %v375_v58 = vsub.f32 %v367_v47, %v373_v57 }
 0x35b   : > { %v378_v59 = vmul.f32 1.442695, %v375_v58  ;;  %v370_v60 = vpop.xlane.xlu0 %369 }
 0x35c   : > { %v374_v61 = vsub.f32 %v366_v53, %v370_v60 }
 0x35d   : > { %619 = vpow2.f32 %v378_v59 }
 0x35e   : > { %v376_v62 = vmul.f32 1.442695, %v374_v61 }
 0x35f   : > { %v446_v5 = vpop.permute.xlu0 %445 }
 0x360   : > { %621 = vpow2.f32 %v376_v62  ;;  %v451_v6 = vsel %vm400_vm5, %v446_v5, 0 }
 0x361   : > { %593 = vmatpush3.bf16.msra.mxu1 %v451_v6 }
 0x367   : > { %v620_v63 = vpop.eup %619 }
 0x368   : > { %v383_v1 = vsel %vm213_vm0, %v620_v63, 0.0 }
 0x369   : > { %384 = vadd.xlane.f32.xlu1 %v383_v1 }
 0x36a   : > { %v622_v2 = vpop.eup %621 }
 0x36b   : > { %v380_v3 = vsel %vm213_vm0, %v622_v2, 0.0 }
 0x36d   : > { %381 = vadd.xlane.f32.xlu1 %v380_v3 }
 0x37e   : > { %395 = vrot.lane.b32.xlu1 %v392_v4, %s646_s10 }
 0x3f6   : > { %v385_v7 = vpop.xlane.xlu1 %384 }
 0x3f7   : > { %623 = vrcp.f32 %v385_v7 }
 0x3fa   : > { %v382_v8 = vpop.xlane.xlu1 %381 }
 0x3fb   : > { %625 = vrcp.f32 %v382_v8 }
 0x3fe   : > { %v396_v9 = vpop.permute.xlu1 %395 }
 0x3ff   : > { %v402_v10 = vsel %vm400_vm5, %v396_v9, 0 }
 0x400   : > { %587 = vmatpush3.bf16.msra.mxu0 %v402_v10 }
 0x401   : > { %v624_v11 = vpop.eup %623 }
 0x402   : > { %v389_v12 = vmul.f32 %v624_v11, %v620_v63 }
 0x404   : > { %v391_v13 = vpack.c.bf16 %v389_v12, %v389_v12 }
 0x405   : > { %v626_v14 = vpop.eup %625 }
 0x406   : > { %v388_v15 = vmul.f32 %v626_v14, %v622_v2  ;;  %595 = vmatmul.mubr.msk.bf16.vlgmr.msra.gmra.mrb[4].mxu1 %vm213_vm0, %v391_v13 }
 0x408   : > { %v390_v0 = vpack.c.bf16 %v388_v15, %v388_v15 }
 0x40a   : > { %589 = vmatmul.mubr.msk.bf16.vlgmr.msra.gmra.mrb[4].mxu0 %vm213_vm0, %v390_v0 }
 0x4d9   : > { %v487_v16 = vpop.f32.mrb[4].mxu1 }
 0x4da   : > { %494 = vrot.lane.b32.xlu0 %v487_v16, %s647_s11  ;;  %v596_v17 = vpop.f32.mrb[5].mxu1 }
 0x4db   : > { %v490_v18 = vpop.f32.mrb[6].mxu1 }
 0x4dc   : > { %v597_v19 = vpop.f32.mrb[7].mxu1 }
 0x4dd   : > { %v438_v20 = vpop.f32.mrb[4].mxu0 }
 0x4de   : > { %v590_v21 = vpop.f32.mrb[5].mxu0 }
 0x4df   : > { %v441_v22 = vpop.f32.mrb[6].mxu0 }
 0x4e0   : > { %v591_v23 = vpop.f32.mrb[7].mxu0 }
 0x54c   : > { %v495_v24 = vpop.permute.xlu0 %494 }
 0x54d   : > { %v497_v25 = vsel %vm263_vm3, %v438_v20, %v495_v24 }
 0x54e   : > { %499 = vst.msk [vmem:[%s192_s14] sm:$0xff] %vm498_vm6, %v497_v25 }
 0x54f PF: > { %s14_s15 = sadd.s32 1, %s633_s15  }
 0x550   : > { %p11_p4 = scmp.ge.s32.totalorder %s14_s15, 4  }
 0x552   :  { %13 = sbr.rel (!%p11_p4) target bundleno = 1 (0x1), region = 66 }

// kernel: token_importance_predictor_forward.13
= control target key start
LH: loop header
LB: loop body
LE: loop exit
PB: predicated region body
PF: predicated region fallthrough
CT: control target
= control target key end

     0   :  { %vm28_vm0 = vcmask 523264   ;;  %v227_v0 = vmov 0.0   ;;  %vm228_vm1 = vmmov 0   ;;  %s311_s1 = inlined_call_operand.vmem [shape: bf16[64,64], index: 1, kind: input, shape index: {}]   ;;  %s312_s0 = inlined_call_operand.vmem [shape: bf16[16,64], index: 0, kind: input, shape index: {}]   ;;  %s313_s2 = inlined_call_operand.vmem [shape: f32[1,64], index: 2, kind: input, shape index: {}]   ;;  %s314_s3 = inlined_call_operand.vmem [shape: f32[16,64], index: 3, kind: input, shape index: {}]   ;;  %s315_s4 = inlined_call_operand.vmem [shape: f32[1,64], index: 4, kind: input, shape index: {}]   ;;  %s316_s5 = inlined_call_operand.vmem [shape: f32[1,64], index: 5, kind: input, shape index: {}]   ;;  %s317_s6 = inlined_call_operand.vmem [shape: f32[16,64], index: 6, kind: output, shape index: {}]  }
   0x1   :  { %204 = vmatprep.subr.bf16.mxu0 %v227_v0  ;;  %v218_v1 = vld [vmem:[%s311_s1] sm:$0xff]   ;;  %212 = vmatprep.mubr.msk.bf16.mxu0 %vm228_vm1, %v227_v0  ;;  %29 = vst.msk [vmem:[#allocation2] sm:$0xff] %vm28_vm0, %v227_v0  ;;  %30 = vst.msk [vmem:[#allocation2 + $0x8] sm:$0xff] %vm28_vm0, %v227_v0  ;;  %v219_v2 = vld [vmem:[%s311_s1 + $0x8] sm:$0xff]  }
   0x2   :  { %205 = vmatpush3.bf16.msra.mxu0 %v218_v1  ;;  %v220_v3 = vld [vmem:[%s311_s1 + $0x10] sm:$0xff]   ;;  %v221_v4 = vld [vmem:[%s311_s1 + $0x18] sm:$0xff]   ;;  %v222_v5 = vld [vmem:[%s312_s0] sm:$0xff]  }
   0x3   :  { %206 = vmatprep.subr.bf16.mxu0 %v227_v0  ;;  %v196_v14 = vld [vmem:[%s313_s2] ss:$0 sm:$0xff]  ;;  %v136_v19 = vld [vmem:[%s314_s3 + $0x8] sm:$0xff] }
   0x4   :  { %v135_v16 = vld [vmem:[%s314_s3] sm:$0xff] }
   0x5   :  { %v197_v42 = vld [vmem:[%s315_s4] ss:$0 sm:$0xff] }
   0x6   :  { %207 = vmatpush3.bf16.msra.mxu0 %v219_v2  ;;  %v198_v44 = vld [vmem:[%s316_s5] ss:$0 sm:$0xff] }
   0x7   :  { %208 = vmatprep.subr.bf16.mxu0 %v227_v0 }
   0x8   :  { %v31_v6 = vld [vmem:[#allocation2] sm:$0xff]  ;;  %v32_v8 = vld [vmem:[#allocation2 + $0x8] sm:$0xff] }
   0xa   :  { %209 = vmatpush3.bf16.msra.mxu0 %v220_v3 }
   0xb   :  { %210 = vmatprep.subr.bf16.mxu0 %v227_v0 }
   0xe   :  { %211 = vmatpush3.bf16.msra.mxu0 %v221_v4 }
  0x11   :  { %213 = vmatmul.mubr.msk.bf16.vlgmr.msra.gmra.mrb[0].mxu0 %vm28_vm0, %v222_v5 }
  0xe4   :  { %v110_v7 = vpop.f32.mrb[0].mxu0 }
  0xe5   :  { %v117_v9 = vadd.f32 %v110_v7, %v31_v6  ;;  %v214_v10 = vpop.f32.mrb[1].mxu0 }
  0xe6   :  { %v113_v11 = vpop.f32.mrb[2].mxu0 }
  0xe7   :  { %119 = vst.msk [vmem:[#allocation2] sm:$0xff] %vm28_vm0, %v117_v9  ;;  %v118_v12 = vadd.f32 %v113_v11, %v32_v8  ;;  %v215_v13 = vpop.f32.mrb[3].mxu0 }
  0xe9   :  { %120 = vst.msk [vmem:[#allocation2 + $0x8] sm:$0xff] %vm28_vm0, %v118_v12 }
  0xee   :  { %v124_v15 = vld [vmem:[#allocation2] sm:$0xff] }
  0xef   :  { %v133_v17 = vadd.f32 %v196_v14, %v124_v15 }
  0xf0   :  { %v125_v18 = vld [vmem:[#allocation2 + $0x8] sm:$0xff] }
  0xf1   :  { %v137_v20 = vadd.f32 %v135_v16, %v133_v17  ;;  %v134_v21 = vadd.f32 %v196_v14, %v125_v18 }
  0xf3   :  { %v139_v22 = vsel %vm28_vm0, %v137_v20, 0.0  ;;  %v138_v23 = vadd.f32 %v136_v19, %v134_v21 }
  0xf4   :  { %140 = vadd.xlane.f32.xlu0 %v139_v22 }
  0xf5   :  { %v142_v24 = vsel %vm28_vm0, %v138_v23, 0.0 }
  0xf8   :  { %143 = vadd.xlane.f32.xlu0 %v142_v24 }
 0x181   :  { %v141_v25 = vpop.xlane.xlu0 %140 }
 0x182   :  { %v146_v26 = vmul.f32 0.015625, %v141_v25 }
 0x184   :  { %v148_v27 = vsub.f32 %v137_v20, %v146_v26 }
 0x185   :  { %v144_v28 = vpop.xlane.xlu0 %143 }
 0x186   :  { %v147_v29 = vmul.f32 0.015625, %v144_v28  ;;  %v150_v30 = vmul.f32 %v148_v27, %v148_v27 }
 0x188   :  { %v149_v31 = vsub.f32 %v138_v23, %v147_v29  ;;  %v152_v32 = vsel %vm28_vm0, %v150_v30, 0.0 }
 0x189   :  { %153 = vadd.xlane.f32.xlu1 %v152_v32 }
 0x18a   :  { %v151_v33 = vmul.f32 %v149_v31, %v149_v31 }
 0x18c   :  { %v155_v34 = vsel %vm28_vm0, %v151_v33, 0.0 }
 0x18d   :  { %156 = vadd.xlane.f32.xlu1 %v155_v34 }
 0x216   :  { %v154_v35 = vpop.xlane.xlu1 %153 }
 0x217   :  { %v158_v36 = vmul.f32 0.015625, %v154_v35 }
 0x219   :  { %v160_v37 = vadd.f32 1e-05, %v158_v36 }
 0x21a   :  { %v157_v38 = vpop.xlane.xlu1 %156 }
 0x21b   :  { %223 = vrsqrt.f32 %v160_v37  ;;  %v159_v39 = vmul.f32 0.015625, %v157_v38 }
 0x21d   :  { %v161_v40 = vadd.f32 1e-05, %v159_v39 }
 0x21f   :  { %225 = vrsqrt.f32 %v161_v40 }
 0x225   :  { %v224_v41 = vpop.eup %223 }
 0x226   :  { %v164_v43 = vmul.f32 %v224_v41, %v148_v27 }
 0x228   :  { %v173_v45 = vmul.f32 %v197_v42, %v164_v43 }
 0x229   :  { %v226_v46 = vpop.eup %225 }
 0x22a   :  { %v182_v47 = vadd.f32 %v198_v44, %v173_v45  ;;  %v165_v48 = vmul.f32 %v226_v46, %v149_v31 }
 0x22c   :  { %184 = vst.msk [vmem:[%s317_s6] sm:$0xff] %vm28_vm0, %v182_v47  ;;  %v174_v49 = vmul.f32 %v197_v42, %v165_v48 }
 0x22e   :  { %v183_v50 = vadd.f32 %v198_v44, %v174_v49 }
 0x230   :  { %185 = vst.msk [vmem:[%s317_s6 + $0x8] sm:$0xff] %vm28_vm0, %v183_v50 }

// kernel: token_importance_predictor_forward.14
= control target key start
LH: loop header
LB: loop body
LE: loop exit
PB: predicated region body
PF: predicated region fallthrough
CT: control target
= control target key end

     0   :  { %vm20_vm0 = vcmask 523264   ;;  %v224_v15 = vmov 0.0   ;;  %vm225_vm1 = vmmov 0   ;;  %s283_s0 = inlined_call_operand.vmem [shape: f32[16,64], index: 0, kind: input, shape index: {}]   ;;  %s284_s3 = inlined_call_operand.vmem [shape: bf16[64,128], index: 3, kind: input, shape index: {}]   ;;  %s285_s1 = inlined_call_operand.vmem [shape: f32[1,64], index: 1, kind: input, shape index: {}]   ;;  %s286_s2 = inlined_call_operand.vmem [shape: f32[1,64], index: 2, kind: input, shape index: {}]   ;;  %s287_s4 = inlined_call_operand.vmem [shape: bf16[16,128], index: 4, kind: output, shape index: {}]  }
   0x1   :  { %v18_v0 = vld [vmem:[%s283_s0] sm:$0xff]  ;;  %v19_v1 = vld [vmem:[%s283_s0 + $0x8] sm:$0xff]  ;;  %194 = vmatprep.subr.bf16.mxu0 %v224_v15  ;;  %v210_v17 = vld [vmem:[%s284_s3 + $0x10] sm:$0xff]   ;;  %202 = vmatprep.mubr.msk.bf16.mxu0 %vm225_vm1, %v224_v15 }
   0x2   :  { %v21_v2 = vsel %vm20_vm0, %v18_v0, 0.0  ;;  %v24_v3 = vsel %vm20_vm0, %v19_v1, 0.0  ;;  %v208_v14 = vld [vmem:[%s284_s3] sm:$0xff]   ;;  %v209_v16 = vld [vmem:[%s284_s3 + $0x8] sm:$0xff]   ;;  %v211_v18 = vld [vmem:[%s284_s3 + $0x18] sm:$0xff]  }
   0x3   :  { %22 = vadd.xlane.f32.xlu0 %v21_v2  ;;  %195 = vmatpush3.bf16.msra.mxu0 %v208_v14  ;;  %v171_v27 = vld [vmem:[%s285_s1] ss:$0 sm:$0xff] }
   0x4   :  { %196 = vmatprep.subr.bf16.mxu0 %v224_v15  ;;  %v172_v31 = vld [vmem:[%s286_s2] ss:$0 sm:$0xff] }
   0x7   :  { %25 = vadd.xlane.f32.xlu0 %v24_v3  ;;  %197 = vmatpush3.bf16.msra.mxu0 %v209_v16 }
   0x8   :  { %198 = vmatprep.subr.bf16.mxu0 %v224_v15 }
   0xb   :  { %199 = vmatpush3.bf16.msra.mxu0 %v210_v17 }
   0xc   :  { %200 = vmatprep.subr.bf16.mxu0 %v224_v15 }
   0xf   :  { %201 = vmatpush3.bf16.msra.mxu0 %v211_v18 }
  0x90   :  { %v23_v4 = vpop.xlane.xlu0 %22 }
  0x91   :  { %v28_v5 = vmul.f32 0.015625, %v23_v4 }
  0x93   :  { %v30_v6 = vsub.f32 %v18_v0, %v28_v5 }
  0x94   :  { %v26_v7 = vpop.xlane.xlu0 %25 }
  0x95   :  { %v29_v8 = vmul.f32 0.015625, %v26_v7  ;;  %v32_v9 = vmul.f32 %v30_v6, %v30_v6 }
  0x97   :  { %v31_v10 = vsub.f32 %v19_v1, %v29_v8  ;;  %v34_v11 = vsel %vm20_vm0, %v32_v9, 0.0 }
  0x98   :  { %35 = vadd.xlane.f32.xlu1 %v34_v11 }
  0x99   :  { %v33_v12 = vmul.f32 %v31_v10, %v31_v10 }
  0x9b   :  { %v37_v13 = vsel %vm20_vm0, %v33_v12, 0.0 }
  0x9c   :  { %38 = vadd.xlane.f32.xlu1 %v37_v13 }
 0x125   :  { %v36_v19 = vpop.xlane.xlu1 %35 }
 0x126   :  { %v40_v20 = vmul.f32 0.015625, %v36_v19 }
 0x128   :  { %v42_v21 = vadd.f32 1e-05, %v40_v20 }
 0x129   :  { %v39_v22 = vpop.xlane.xlu1 %38 }
 0x12a   :  { %212 = vrsqrt.f32 %v42_v21  ;;  %v41_v23 = vmul.f32 0.015625, %v39_v22 }
 0x12c   :  { %v43_v24 = vadd.f32 1e-05, %v41_v23 }
 0x12e   :  { %214 = vrsqrt.f32 %v43_v24 }
 0x134   :  { %v213_v25 = vpop.eup %212 }
 0x135   :  { %v46_v26 = vmul.f32 %v213_v25, %v30_v6 }
 0x137   :  { %v55_v30 = vmul.f32 %v171_v27, %v46_v26 }
 0x138   :  { %v215_v28 = vpop.eup %214 }
 0x139   :  { %v47_v29 = vmul.f32 %v215_v28, %v31_v10  ;;  %v64_v33 = vadd.f32 %v172_v31, %v55_v30 }
 0x13b   :  { %v56_v32 = vmul.f32 %v171_v27, %v47_v29 }
 0x13d   :  { %v65_v34 = vadd.f32 %v172_v31, %v56_v32 }
 0x13f   :  { %v66_v35 = vpack.c.bf16 %v65_v34, %v64_v33 }
 0x141   :  { %203 = vmatmul.mubr.msk.bf16.vlgmr.msra.gmra.mrb[0].mxu0 %vm20_vm0, %v66_v35 }
 0x214   :  { %v136_v36 = vpop.f32.mrb[0].mxu0 }
 0x215   :  { %v178_v37 = vmul.f32 -1.442695, %v136_v36  ;;  %v204_v38 = vpop.f32.mrb[1].mxu0 }
 0x216   :  { %v139_v39 = vpop.f32.mrb[2].mxu0 }
 0x217   :  { %216 = vpow2.f32 %v178_v37  ;;  %v179_v40 = vmul.f32 -1.442695, %v139_v39  ;;  %v205_v41 = vpop.f32.mrb[3].mxu0 }
 0x219   :  { %218 = vpow2.f32 %v179_v40 }
 0x221   :  { %v217_v42 = vpop.eup %216 }
 0x222   :  { %v149_v43 = vadd.f32 1.0, %v217_v42 }
 0x223   :  { %v219_v44 = vpop.eup %218 }
 0x224   :  { %220 = vrcp.f32 %v149_v43  ;;  %v150_v45 = vadd.f32 1.0, %v219_v44 }
 0x226   :  { %222 = vrcp.f32 %v150_v45 }
 0x22e   :  { %v221_v46 = vpop.eup %220 }
 0x22f   :  { %v155_v48 = vmul.f32 %v221_v46, %v136_v36 }
 0x230   :  { %v223_v47 = vpop.eup %222 }
 0x231   :  { %v156_v49 = vmul.f32 %v223_v47, %v139_v39 }
 0x233   :  { %v187_v50 = vpack.c.bf16 %v156_v49, %v155_v48 }
 0x235   :  { %188 = vst [vmem:[%s287_s4] sm:$0xff] %v187_v50  }

// kernel: token_importance_predictor_forward.16
= control target key start
LH: loop header
LB: loop body
LE: loop exit
PB: predicated region body
PF: predicated region fallthrough
CT: control target
= control target key end

     0   :  { %vm16_vm0 = vcmask 523264   ;;  %v150_v0 = vmov 0.0   ;;  %vm151_vm1 = vmmov 0   ;;  %s195_s1 = inlined_call_operand.vmem [shape: bf16[64,64], index: 1, kind: input, shape index: {}]   ;;  %s196_s0 = inlined_call_operand.vmem [shape: bf16[16,64], index: 0, kind: input, shape index: {}]   ;;  %s197_s2 = inlined_call_operand.vmem [shape: f32[16,64], index: 2, kind: output, shape index: {}]  }
   0x1   :  { %131 = vmatprep.subr.bf16.mxu0 %v150_v0  ;;  %v145_v1 = vld [vmem:[%s195_s1] sm:$0xff]   ;;  %139 = vmatprep.mubr.msk.bf16.mxu0 %vm151_vm1, %v150_v0  ;;  %17 = vst.msk [vmem:[#allocation2] sm:$0xff] %vm16_vm0, %v150_v0  ;;  %18 = vst.msk [vmem:[#allocation2 + $0x8] sm:$0xff] %vm16_vm0, %v150_v0  ;;  %v146_v2 = vld [vmem:[%s195_s1 + $0x8] sm:$0xff]  }
   0x2   :  { %132 = vmatpush3.bf16.msra.mxu0 %v145_v1  ;;  %v147_v3 = vld [vmem:[%s195_s1 + $0x10] sm:$0xff]   ;;  %v148_v4 = vld [vmem:[%s195_s1 + $0x18] sm:$0xff]   ;;  %v149_v5 = vld [vmem:[%s196_s0] sm:$0xff]  }
   0x3   :  { %133 = vmatprep.subr.bf16.mxu0 %v150_v0 }
   0x6   :  { %134 = vmatpush3.bf16.msra.mxu0 %v146_v2 }
   0x7   :  { %135 = vmatprep.subr.bf16.mxu0 %v150_v0 }
   0x8   :  { %v19_v6 = vld [vmem:[#allocation2] sm:$0xff]  ;;  %v20_v8 = vld [vmem:[#allocation2 + $0x8] sm:$0xff] }
   0xa   :  { %136 = vmatpush3.bf16.msra.mxu0 %v147_v3 }
   0xb   :  { %137 = vmatprep.subr.bf16.mxu0 %v150_v0 }
   0xe   :  { %138 = vmatpush3.bf16.msra.mxu0 %v148_v4 }
  0x11   :  { %140 = vmatmul.mubr.msk.bf16.vlgmr.msra.gmra.mrb[0].mxu0 %vm16_vm0, %v149_v5 }
  0xe4   :  { %v98_v7 = vpop.f32.mrb[0].mxu0 }
  0xe5   :  { %v105_v9 = vadd.f32 %v98_v7, %v19_v6  ;;  %v141_v10 = vpop.f32.mrb[1].mxu0 }
  0xe6   :  { %v101_v11 = vpop.f32.mrb[2].mxu0 }
  0xe7   :  { %107 = vst.msk [vmem:[#allocation2] sm:$0xff] %vm16_vm0, %v105_v9  ;;  %v106_v12 = vadd.f32 %v101_v11, %v20_v8  ;;  %v142_v13 = vpop.f32.mrb[3].mxu0 }
  0xe9   :  { %108 = vst.msk [vmem:[#allocation2 + $0x8] sm:$0xff] %vm16_vm0, %v106_v12 }
  0xee   :  { %v112_v14 = vld [vmem:[#allocation2] sm:$0xff] }
  0xef   :  { %114 = vst.msk [vmem:[%s197_s2] sm:$0xff] %vm16_vm0, %v112_v14 }
  0xf0   :  { %v113_v15 = vld [vmem:[#allocation2 + $0x8] sm:$0xff] }
  0xf1   :  { %115 = vst.msk [vmem:[%s197_s2 + $0x8] sm:$0xff] %vm16_vm0, %v113_v15 }

// kernel: token_importance_predictor_forward.17
= control target key start
LH: loop header
LB: loop body
LE: loop exit
PB: predicated region body
PF: predicated region fallthrough
CT: control target
= control target key end

     0   :  { %s491_s21 = smov 0   ;;  %s529_s0 = inlined_call_operand.vmem [shape: f32[2,8,64], index: 0, kind: input, shape index: {}]   ;;  %s530_s1 = inlined_call_operand.vmem [shape: f32[2,8,64], index: 1, kind: input, shape index: {}]   ;;  %s531_s2 = inlined_call_operand.vmem [shape: f32[8,64], index: 2, kind: input, shape index: {}]   ;;  %s532_s3 = inlined_call_operand.vmem [shape: f32[8,64], index: 3, kind: input, shape index: {}]   ;;  %s533_s4 = inlined_call_operand.vmem [shape: f32[8,64], index: 4, kind: input, shape index: {}]   ;;  %s534_s5 = inlined_call_operand.vmem [shape: f32[2,8,64], index: 5, kind: output, shape index: {0}]   ;;  %s535_s6 = inlined_call_operand.vmem [shape: f32[2,8,64], index: 6, kind: output, shape index: {1}]  }
   0x1 LB: > { %s421_s22 = sadd.s32 4294967295, %s450_s21   ;;  %p425_p0 = scmp.ge.s32.totalorder %s450_s21, 1  ;;  %s450_s21 = sphi %s491_s21, %s17_s21  }
   0x2   : > { %p223_p1 = scmp.lt.s32.totalorder %s450_s21, 3 }
   0x4   : > { %p224_p2 = pnand %p425_p0, %p223_p1 }
   0x5   : > { %p259_p3 = scmp.lt.s32.totalorder (!%p224_p2), %s421_s22, 1  ;;  %s452_s30 = smov (!%p224_p2), 120   ;;  %vm286_vm0 = vcmask (!%p224_p2), 457728   ;;  %v275_v4 = vld [vmem:[%s531_s2] sm:$0xff] (!%p224_p2)  ;;  %vm294_vm1 = vcmask (!%p224_p2), 64512   ;;  %vm301_vm2 = vcmask (!%p224_p2), 523264  }
   0x6   : > { %227 = sbr.rel (%p224_p2) target bundleno = 151 (0x97), region = 40  ;;  %s453_s7 = smov (!%p224_p2), 56   ;;  %v276_v5 = vld [vmem:[%s532_s3] sm:$0xff] (!%p224_p2) }
   0x7   : > { %s454_s8 = smov (!%p224_p2), 8   ;;  %s455_s9 = smov (!%p224_p2), 72   ;;  %v277_v12 = vld [vmem:[%s533_s4] sm:$0xff] (!%p224_p2) }
   0xd   : > { %s537_s22 = smov (!%p259_p3, %s421_s22), 1 }
   0xe   : > { %s499_s23 = sshll.u32 %s537_s22, 3 }
   0xf   : > { %s266_s26 = scalar_lea.vmem %s530_s1, %s499_s23  ;;  %s262_s29 = scalar_lea.vmem %s529_s0, %s499_s23 }
  0x10   : > { %v303_v0 = vld [vmem:[%s266_s26] sm:$0xff]  ;;  %s270_s18 = scalar_lea.vmem %s534_s5, %s499_s23  ;;  %s274_s22 = scalar_lea.vmem %s535_s6, %s499_s23 }
  0x11   : > { %v278_v1 = vld [vmem:[%s262_s29] sm:$0xff]  ;;  %305 = vrot.lane.b32.xlu1 %v303_v0, %s452_s30  ;;  %v319_v16 = vmul.f32 %v303_v0, %v275_v4 }
  0x12   : > { %280 = vrot.lane.b32.xlu0 %v278_v1, %s452_s30  ;;  %v296_v9 = vmul.f32 %v278_v1, %v275_v4 }
  0x15   : > { %308 = vrot.lane.b32.xlu1 %v303_v0, %s453_s7 }
  0x16   : > { %283 = vrot.lane.b32.xlu0 %v278_v1, %s453_s7 }
  0x19   : > { %291 = vrot.lane.b32.xlu1 %v278_v1, %s454_s8 }
  0x1a   : > { %288 = vrot.lane.b32.xlu0 %v278_v1, %s455_s9 }
  0x1d   : > { %315 = vrot.lane.b32.xlu1 %v303_v0, %s454_s8 }
  0x1e   : > { %312 = vrot.lane.b32.xlu0 %v303_v0, %s455_s9 }
  0x83   : > { %v306_v2 = vpop.permute.xlu1 %305 }
  0x84   : > { %v281_v3 = vpop.permute.xlu0 %280 }
  0x87   : > { %v309_v6 = vpop.permute.xlu1 %308 }
  0x88   : > { %v284_v7 = vpop.permute.xlu0 %283  ;;  %v311_v11 = vsel %vm286_vm0, %v306_v2, %v309_v6 }
  0x89   : > { %v287_v8 = vsel %vm286_vm0, %v281_v3, %v284_v7  ;;  %v320_v17 = vmul.f32 %v311_v11, %v276_v5 }
  0x8a   : > { %v297_v10 = vmul.f32 %v287_v8, %v276_v5 }
  0x8b   : > { %v292_v13 = vpop.permute.xlu1 %291  ;;  %v321_v24 = vadd.f32 %v320_v17, %v319_v16 }
  0x8c   : > { %v289_v14 = vpop.permute.xlu0 %288  ;;  %v298_v18 = vadd.f32 %v297_v10, %v296_v9 }
  0x8d   : > { %v295_v15 = vsel %vm294_vm1, %v289_v14, %v292_v13 }
  0x8e   : > { %v299_v19 = vmul.f32 %v295_v15, %v277_v12 }
  0x8f   : > { %v316_v21 = vpop.permute.xlu1 %315 }
  0x90   : > { %v300_v20 = vadd.f32 %v299_v19, %v298_v18  ;;  %v313_v22 = vpop.permute.xlu0 %312 }
  0x91   : > { %v318_v23 = vsel %vm294_vm1, %v313_v22, %v316_v21 }
  0x92   : > { %302 = vst.msk [vmem:[%s270_s18] sm:$0xff] %vm301_vm2, %v300_v20  ;;  %v322_v25 = vmul.f32 %v318_v23, %v277_v12 }
  0x94   : > { %v323_v26 = vadd.f32 %v322_v25, %v321_v24 }
  0x96   : > { %324 = vst.msk [vmem:[%s274_s22] sm:$0xff] %vm301_vm2, %v323_v26 }
  0x97 PF: > { %s17_s21 = sadd.s32 1, %s450_s21  }
  0x98   : > { %p14_p4 = scmp.ge.s32.totalorder %s17_s21, 4  }
  0x9a   :  { %16 = sbr.rel (!%p14_p4) target bundleno = 1 (0x1), region = 85 }

</bundles_post_ra>
